<compile_context>
chip_gen: v7x
topology: tpu7x:2x2x1
jax: 0.10.0
libtpu: 0.0.40
codegen_flags: <defaults>
</compile_context>

<pallas_src>
import math
from functools import lru_cache

import jax
import jax.numpy as jnp
from jax import lax
from jax.experimental import pallas as pl
from jax.experimental.pallas import tpu as pltpu

# Problem sizes (small, consistent with the module's forward).
T = 24       # time_steps  (== n_steps passed to transition_model)
D_OBS = 8    # obs_dim
L = 32       # latent_dim
DT = 0.1
LOG_2PI = 1.8378770664093453

# ---- packed parameter slab layout (rows are 8-sublane aligned) --------------
P_W_ENC = 0              # (D_OBS, 2L)  [w_enc_mu | w_enc_lv]
P_B_ENC = 8              # (1, 2L)
P_W_ODE = 16             # (L, L)
P_B_ODE = 48             # (1, L)
P_W_EM = 56              # (L, 2*D_OBS) [w_em_mu | w_em_lv]
P_B_EM = 88              # (1, 2*D_OBS)
P_ROWS = 96
P_COLS = 2 * L           # 64


def _round_up(x, m):
    return ((x + m - 1) // m) * m


def _data_layout(batch):
    """Row offsets inside the packed (rows, L) data slab: obs_tb | obs_mean | eps."""
    r_mean = _round_up(T * batch, 8)
    r_eps = r_mean + _round_up(batch, 8)
    rows = r_eps + _round_up(batch, 8)
    return r_mean, r_eps, rows


def pack_params(params):
    """Pack the ten small weight/bias tensors into one contiguous VMEM slab.

    Do this ONCE per parameter update, not per forward call."""
    w_enc = jnp.concatenate([params["w_enc_mu"], params["w_enc_lv"]], axis=1)   # (8, 64)
    b_enc = jnp.concatenate([params["b_enc_mu"], params["b_enc_lv"]], axis=1)   # (1, 64)
    w_em = jnp.concatenate([params["w_em_mu"], params["w_em_lv"]], axis=1)      # (32, 16)
    b_em = jnp.concatenate([params["b_em_mu"], params["b_em_lv"]], axis=1)      # (1, 16)
    slab = jnp.zeros((P_ROWS, P_COLS), jnp.float32)
    slab = slab.at[P_W_ENC:P_W_ENC + D_OBS, 0:2 * L].set(w_enc)
    slab = slab.at[P_B_ENC:P_B_ENC + 1, 0:2 * L].set(b_enc)
    slab = slab.at[P_W_ODE:P_W_ODE + L, 0:L].set(params["w_ode"])
    slab = slab.at[P_B_ODE:P_B_ODE + 1, 0:L].set(params["b_ode"])
    slab = slab.at[P_W_EM:P_W_EM + L, 0:2 * D_OBS].set(w_em)
    slab = slab.at[P_B_EM:P_B_EM + 1, 0:2 * D_OBS].set(b_em)
    return slab


@lru_cache(maxsize=None)
def _build_elbo_call(batch):
    """Build (and cache) the fused ELBO pallas_call for a given batch size."""
    TB = T * batch
    r_mean, r_eps, data_rows = _data_layout(batch)

    # Chunk the rollout's history stores so each store is a full multiple of 8
    # sublanes (unmasked vst) at an aligned offset.
    ch = 8 // math.gcd(8, batch)
    if T % ch != 0:
        ch = 1
    n_chunks = T // ch
    rows_per_chunk = ch * batch

    def kernel(prior_ref,        # (1, 2)          f32 SMEM  [mean, log_var]
               data_ref,         # (data_rows, L)  f32 VMEM  obs_tb | obs_mean | eps
               p_ref,            # (P_ROWS, P_COLS) f32 VMEM  packed parameters
               nll_ref, kl_ref,  # (1, 1) f32 SMEM outputs
               z_hist_ref):      # (TB, L) f32 VMEM scratch
        prior_mean = prior_ref[0, 0]
        prior_log_var = prior_ref[0, 1]

        # ---- packed parameters: static, 8-row-aligned slices (cheap views).
        w_enc = p_ref[P_W_ENC:P_W_ENC + D_OBS, :]              # (D, 2L)
        b_enc = p_ref[P_B_ENC:P_B_ENC + 1, :]                  # (1, 2L)
        w_ode = p_ref[P_W_ODE:P_W_ODE + L, 0:L]                # (L, L)
        b_ode = p_ref[P_B_ODE:P_B_ODE + 1, 0:L]                # (1, L)
        w_em = p_ref[P_W_EM:P_W_EM + L, 0:2 * D_OBS]           # (L, 2D)
        b_em = p_ref[P_B_EM:P_B_EM + 1, 0:2 * D_OBS]           # (1, 2D)

        obs_mean = data_ref[r_mean:r_mean + batch, 0:D_OBS]    # (B, D)
        eps = data_ref[r_eps:r_eps + batch, 0:L]               # (B, L)

        # ---- inference model: fused mu|log_var head, one (B,D)@(D,2L) matmul.
        enc = jnp.dot(obs_mean, w_enc,
                      preferred_element_type=jnp.float32) + b_enc
        z0_mu = enc[:, 0:L]
        z0_lv = enc[:, L:2 * L]

        # ---- reparameterization trick
        z0 = z0_mu + eps * jnp.exp(0.5 * z0_lv)                # (B, L)

        # ---- KL( N(z0_mu, exp(z0_lv)) || N(prior_mean, exp(prior_log_var)) )
        kl_elem = 0.5 * (prior_log_var - z0_lv
                         + (jnp.exp(z0_lv) + (z0_mu - prior_mean) ** 2)
                         * jnp.exp(-prior_log_var)
                         - 1.0)
        # .mean() * latent_dim  ==  sum / batch
        kl_ref[0, 0] = jnp.sum(kl_elem) * (1.0 / batch)

        # ---- Euler ODE rollout: only the serial drift chain stays per-step.
        #      Pre-step states (sample t) are buffered in vregs for `ch` steps
        #      and flushed as one aligned, unmasked 8k-sublane store.
        b_ode_b = jnp.broadcast_to(b_ode, (batch, L))          # hoisted broadcast

        def _chunk(c, z):
            zs = []
            for _ in range(ch):
                zs.append(z)                                   # sample = pre-step z
                dz = jnp.tanh(jnp.dot(z, w_ode,
                                      preferred_element_type=jnp.float32)
                              + b_ode_b)
                z = z + DT * dz
            r0 = pl.multiple_of(c * rows_per_chunk, rows_per_chunk)
            blk = zs[0] if ch == 1 else jnp.concatenate(zs, axis=0)
            z_hist_ref[pl.ds(r0, rows_per_chunk), :] = blk
            return z

        # Final carry intentionally discarded: z_hist holds all T samples
        # (the last drift eval mirrors the reference and is unused).
        lax.fori_loop(0, n_chunks, _chunk, z0, unroll=True)

        # ---- emission + Gaussian NLL: ONE fused batched matmul over all samples
        z_all = z_hist_ref[...]                                # (TB, L)
        em = jnp.dot(z_all, w_em,
                     preferred_element_type=jnp.float32) + b_em
        em_mu = em[:, 0:D_OBS]
        em_lv = em[:, D_OBS:2 * D_OBS]
        obs_tb = data_ref[0:TB, 0:D_OBS]                       # (TB, D), (t,b) rows
        diff = obs_tb - em_mu
        nll = 0.5 * (em_lv + diff * diff * jnp.exp(-em_lv) + LOG_2PI)
        # gaussian_nll(...).mean() * obs_dim  ==  sum / (batch * T)
        nll_ref[0, 0] = jnp.sum(nll) * (1.0 / (batch * T))

    flops = (2 * batch * D_OBS * (2 * L)          # encoder
             + 2 * T * batch * L * L              # rollout drift matmuls
             + 2 * T * batch * L * (2 * D_OBS))   # emission
    transcendentals = T * batch * L + 2 * batch * L + T * batch * D_OBS
    bytes_accessed = 4 * (data_rows * L + P_ROWS * P_COLS + 2 + 2)
    cost = pl.CostEstimate(flops=flops, transcendentals=transcendentals,
                           bytes_accessed=bytes_accessed)

    vmem = pl.BlockSpec(memory_space=pltpu.MemorySpace.VMEM)
    smem = pl.BlockSpec(memory_space=pltpu.MemorySpace.SMEM)
    return pl.pallas_call(
        kernel,
        out_shape=(jax.ShapeDtypeStruct((1, 1), jnp.float32),
                   jax.ShapeDtypeStruct((1, 1), jnp.float32)),
        in_specs=[smem, vmem, vmem],
        out_specs=(smem, smem),
        scratch_shapes=[pltpu.VMEM((TB, L), jnp.float32)],
        cost_estimate=cost,
    )


def elbo_losses_pallas(obs, eps, param_slab, z0_mean=0.0, z0_log_var=0.0):
    """Run the fused ELBO kernel. Returns (logp_obs_loss, kl_loss) device scalars.

    `obs` may have any leading batch size (fuse microbatches / MC eps samples
    caller-side to fill MXU rows); the pallas_call is cached per batch size."""
    obs = obs.astype(jnp.float32)
    eps = eps.astype(jnp.float32)
    batch = obs.shape[0]
    assert obs.shape == (batch, T, D_OBS) and eps.shape == (batch, L)

    # Wrapper-side layout plumbing (free XLA ops): per-timestep rows in (t,b)
    # order, time-mean pooling, and packing into one VMEM data slab.
    obs_tb = jnp.transpose(obs, (1, 0, 2)).reshape(T * batch, D_OBS)
    obs_mean = jnp.mean(obs, axis=1)
    r_mean, r_eps, data_rows = _data_layout(batch)
    pad_b = _round_up(batch, 8) - batch
    data = jnp.concatenate([
        jnp.pad(obs_tb, ((0, r_mean - T * batch), (0, L - D_OBS))),
        jnp.pad(obs_mean, ((0, pad_b), (0, L - D_OBS))),
        jnp.pad(eps, ((0, pad_b), (0, 0))),
    ], axis=0)
    assert data.shape == (data_rows, L)
    prior = jnp.array([[z0_mean, z0_log_var]], dtype=jnp.float32)

    nll, kl = _build_elbo_call(batch)(prior, data, param_slab)
    return nll[0, 0], kl[0, 0]


def ode_continuous_elbo_forward(obs, eps, param_slab, annealing_params, epoch=0,
                                z0_mean=0.0, z0_log_var=0.0):
    """Mirrors ODEContinuousELBO.forward (loss value + logging dict).

    NOTE: `epoch` must be a concrete Python int (the annealing schedule uses
    Python control flow, as in the PyTorch module)."""
    logp_obs_loss, kl_loss = elbo_losses_pallas(obs, eps, param_slab,
                                                z0_mean, z0_log_var)
    annealing_factor = 1.0
    if annealing_params["enabled"]:
        if epoch < annealing_params["warm_up"]:
            annealing_factor = 0.0
        else:
            annealing_factor = min(
                (epoch - annealing_params["warm_up"])
                / annealing_params["n_epochs_for_full"], 1.0)
    total_loss = logp_obs_loss + annealing_factor * kl_loss
    # Device scalars are kept on-device (no per-step .item() host syncs).
    logging = {
        "Training loss": total_loss,
        "log_p observation loss": logp_obs_loss,
        "KL loss": kl_loss,
        "logp + kl loss": logp_obs_loss + kl_loss,
        "annealing_factor": annealing_factor,
        "epoch": epoch,
    }
    return total_loss, logging


def _reference_losses(obs, eps, params, z0_mean=0.0, z0_log_var=0.0):
    """Pure-JAX reference implementation (for validation only)."""
    obs = obs.astype(jnp.float32)
    batch = obs.shape[0]
    obs_mean = jnp.mean(obs, axis=1)
    z0_mu = obs_mean @ params["w_enc_mu"] + params["b_enc_mu"]
    z0_lv = obs_mean @ params["w_enc_lv"] + params["b_enc_lv"]
    z = z0_mu + eps * jnp.exp(0.5 * z0_lv)
    kl_elem = 0.5 * (z0_log_var - z0_lv
                     + (jnp.exp(z0_lv) + (z0_mu - z0_mean) ** 2)
                     * jnp.exp(-z0_log_var) - 1.0)
    kl = jnp.mean(kl_elem) * L
    nll_sum = 0.0
    for t in range(T):
        em_mu = z @ params["w_em_mu"] + params["b_em_mu"]
        em_lv = z @ params["w_em_lv"] + params["b_em_lv"]
        diff = obs[:, t, :] - em_mu
        nll_sum = nll_sum + jnp.sum(
            0.5 * (em_lv + diff * diff * jnp.exp(-em_lv) + LOG_2PI))
        z = z + DT * jnp.tanh(z @ params["w_ode"] + params["b_ode"])
    nll = (nll_sum / (batch * T * D_OBS)) * D_OBS
    return nll, kl


def _init_params(key):
    ks = jax.random.split(key, 5)
    scale = 0.1
    return {
        "w_enc_mu": scale * jax.random.normal(ks[0], (D_OBS, L), jnp.float32),
        "w_enc_lv": scale * jax.random.normal(ks[1], (D_OBS, L), jnp.float32),
        "b_enc_mu": jnp.zeros((1, L), jnp.float32),
        "b_enc_lv": jnp.zeros((1, L), jnp.float32),
        "w_ode": scale * jax.random.normal(ks[2], (L, L), jnp.float32),
        "b_ode": jnp.zeros((1, L), jnp.float32),
        "w_em_mu": scale * jax.random.normal(ks[3], (L, D_OBS), jnp.float32),
        "w_em_lv": scale * jax.random.normal(ks[4], (L, D_OBS), jnp.float32),
        "b_em_mu": jnp.zeros((1, D_OBS), jnp.float32),
        "b_em_lv": jnp.zeros((1, D_OBS), jnp.float32),
    }


if __name__ == "__main__":
    B = 2  # batch_size for the demo
    key = jax.random.PRNGKey(0)
    k_obs, k_eps, k_param = jax.random.split(key, 3)

    observation_gt = jax.random.normal(k_obs, (B, T, D_OBS), jnp.float32)
    eps = jax.random.normal(k_eps, (B, L), jnp.float32)  # torch.randn_like(z0_mu)
    params = _init_params(k_param)
    param_slab = pack_params(params)          # pack weights ONCE

    annealing_params = {"enabled": True, "warm_up": 0, "n_epochs_for_full": 100}
    epoch = 10  # annealing_factor = 0.1

    total_loss, logging = ode_continuous_elbo_forward(
        observation_gt, eps, param_slab, annealing_params, epoch=epoch)
    total_loss = jax.block_until_ready(total_loss)

    # Validate against pure-JAX reference.
    nll_ref, kl_ref_val = _reference_losses(observation_gt, eps, params)
    total_ref = nll_ref + logging["annealing_factor"] * kl_ref_val
    assert jnp.allclose(logging["log_p observation loss"], nll_ref,
                        rtol=1e-2, atol=1e-2), (
        float(logging["log_p observation loss"]), float(nll_ref))
    assert jnp.allclose(logging["KL loss"], kl_ref_val, rtol=1e-2, atol=1e-2), (
        float(logging["KL loss"]), float(kl_ref_val))
    assert jnp.allclose(total_loss, total_ref, rtol=1e-2, atol=1e-2), (
        float(total_loss), float(total_ref))

    # TODO(synk): rolling_window_eval (RMSE rolling window) is host-side eval
    # driver logic, not part of forward(); not implemented as a kernel.
    print("KERNEL_OK")
</pallas_src>

<mosaic_0001>
module attributes {stable_mosaic.version = 11 : i64} {
  func.func @kernel(%arg0: memref<1x2xf32, #tpu.memory_space<smem>>, %arg1: memref<64x32xf32, #tpu.memory_space<vmem>>, %arg2: memref<96x64xf32, #tpu.memory_space<vmem>>, %arg3: memref<1x1xf32, #tpu.memory_space<smem>>, %arg4: memref<1x1xf32, #tpu.memory_space<smem>>, %arg5: memref<48x32xf32, #tpu.memory_space<vmem>>) attributes {dimension_semantics = [], scalar_prefetch = 0 : i64, scratch_operands = 1 : i64, tpu.core_type = #tpu.core_type<tc>} {
    %c0 = arith.constant 0 : index
    %c0_0 = arith.constant 0 : index
    %0 = memref.load %arg0[%c0, %c0_0] : memref<1x2xf32, #tpu.memory_space<smem>>
    %c0_1 = arith.constant 0 : index
    %c1 = arith.constant 1 : index
    %1 = memref.load %arg0[%c0_1, %c1] : memref<1x2xf32, #tpu.memory_space<smem>>
    %c0_2 = arith.constant 0 : index
    %c0_3 = arith.constant 0 : index
    %2 = vector.load %arg2[%c0_2, %c0_3] : memref<96x64xf32, #tpu.memory_space<vmem>>, vector<8x64xf32>
    %c8 = arith.constant 8 : index
    %c0_4 = arith.constant 0 : index
    %3 = vector.load %arg2[%c8, %c0_4] : memref<96x64xf32, #tpu.memory_space<vmem>>, vector<1x64xf32>
    %c16 = arith.constant 16 : index
    %c0_5 = arith.constant 0 : index
    %4 = vector.load %arg2[%c16, %c0_5] : memref<96x64xf32, #tpu.memory_space<vmem>>, vector<32x32xf32>
    %c48 = arith.constant 48 : index
    %c0_6 = arith.constant 0 : index
    %5 = vector.load %arg2[%c48, %c0_6] : memref<96x64xf32, #tpu.memory_space<vmem>>, vector<1x32xf32>
    %c56 = arith.constant 56 : index
    %c0_7 = arith.constant 0 : index
    %6 = vector.load %arg2[%c56, %c0_7] : memref<96x64xf32, #tpu.memory_space<vmem>>, vector<32x16xf32>
    %c88 = arith.constant 88 : index
    %c0_8 = arith.constant 0 : index
    %7 = vector.load %arg2[%c88, %c0_8] : memref<96x64xf32, #tpu.memory_space<vmem>>, vector<1x16xf32>
    %c48_9 = arith.constant 48 : index
    %c0_10 = arith.constant 0 : index
    %8 = vector.load %arg1[%c48_9, %c0_10] : memref<64x32xf32, #tpu.memory_space<vmem>>, vector<2x8xf32>
    %c56_11 = arith.constant 56 : index
    %c0_12 = arith.constant 0 : index
    %9 = vector.load %arg1[%c56_11, %c0_12] : memref<64x32xf32, #tpu.memory_space<vmem>>, vector<2x32xf32>
    %cst = arith.constant dense<0.000000e+00> : vector<2x64xf32>
    %10 = tpu.matmul %8, %2, %cst {dimension_numbers = #tpu.dot_dimension_numbers<[1], [0], [0], [1], [0, 0, 1, 1], [], []>} : vector<2x8xf32>, vector<8x64xf32>, vector<2x64xf32> -> vector<2x64xf32>
    %11 = vector.broadcast %3 : vector<1x64xf32> to vector<2x64xf32>
    %12 = arith.addf %10, %11 : vector<2x64xf32>
    %13 = vector.extract_strided_slice %12 {offsets = [0, 0], sizes = [2, 32], strides = [1, 1]} : vector<2x64xf32> to vector<2x32xf32>
    %14 = vector.extract_strided_slice %12 {offsets = [0, 32], sizes = [2, 32], strides = [1, 1]} : vector<2x64xf32> to vector<2x32xf32>
    %cst_13 = arith.constant 5.000000e-01 : f32
    %15 = vector.broadcast %cst_13 : f32 to vector<2x32xf32>
    %16 = arith.mulf %15, %14 : vector<2x32xf32>
    %17 = math.exp %16 : vector<2x32xf32>
    %18 = arith.mulf %9, %17 : vector<2x32xf32>
    %19 = arith.addf %13, %18 : vector<2x32xf32>
    %20 = vector.broadcast %1 : f32 to vector<2x32xf32>
    %21 = arith.subf %20, %14 : vector<2x32xf32>
    %22 = math.exp %14 : vector<2x32xf32>
    %23 = vector.broadcast %0 : f32 to vector<2x32xf32>
    %24 = arith.subf %13, %23 : vector<2x32xf32>
    %25 = arith.mulf %24, %24 : vector<2x32xf32>
    %26 = arith.addf %22, %25 : vector<2x32xf32>
    %cst_14 = arith.constant 0.000000e+00 : f32
    %27 = arith.subf %cst_14, %1 : f32
    %28 = math.exp %27 : f32
    %29 = vector.broadcast %28 : f32 to vector<2x32xf32>
    %30 = arith.mulf %26, %29 : vector<2x32xf32>
    %31 = arith.addf %21, %30 : vector<2x32xf32>
    %cst_15 = arith.constant 1.000000e+00 : f32
    %32 = vector.broadcast %cst_15 : f32 to vector<2x32xf32>
    %33 = arith.subf %31, %32 : vector<2x32xf32>
    %cst_16 = arith.constant 5.000000e-01 : f32
    %34 = vector.broadcast %cst_16 : f32 to vector<2x32xf32>
    %35 = arith.mulf %34, %33 : vector<2x32xf32>
    %36 = vector.shape_cast %35 : vector<2x32xf32> to vector<1x2x32xf32>
    %cst_17 = arith.constant dense<0.000000e+00> : vector<1xf32>
    %37 = vector.multi_reduction <add>, %36, %cst_17 [1, 2] : vector<1x2x32xf32> to vector<1xf32>
    %38 = vector.shape_cast %37 : vector<1xf32> to vector<1x1x1xf32>
    %39 = vector.extract %38[0, 0, 0] : f32 from vector<1x1x1xf32>
    %cst_18 = arith.constant 5.000000e-01 : f32
    %40 = arith.mulf %39, %cst_18 : f32
    %c0_19 = arith.constant 0 : index
    %c0_20 = arith.constant 0 : index
    %41 = memref.load %arg4[%c0_19, %c0_20] : memref<1x1xf32, #tpu.memory_space<smem>>
    memref.store %40, %arg4[%c0_19, %c0_20] : memref<1x1xf32, #tpu.memory_space<smem>>
    %42 = vector.shape_cast %5 : vector<1x32xf32> to vector<1x32xf32>
    %43 = vector.broadcast %42 : vector<1x32xf32> to vector<2x32xf32>
    %c0_i32 = arith.constant 0 : i32
    %cst_21 = arith.constant dense<0.000000e+00> : vector<2x32xf32>
    %44 = tpu.matmul %19, %4, %cst_21 {dimension_numbers = #tpu.dot_dimension_numbers<[1], [0], [0], [1], [0, 0, 1, 1], [], []>} : vector<2x32xf32>, vector<32x32xf32>, vector<2x32xf32> -> vector<2x32xf32>
    %45 = arith.addf %44, %43 : vector<2x32xf32>
    %46 = math.tanh %45 : vector<2x32xf32>
    %cst_22 = arith.constant 1.000000e-01 : f32
    %47 = vector.broadcast %cst_22 : f32 to vector<2x32xf32>
    %48 = arith.mulf %47, %46 : vector<2x32xf32>
    %49 = arith.addf %19, %48 : vector<2x32xf32>
    %cst_23 = arith.constant dense<0.000000e+00> : vector<2x32xf32>
    %50 = tpu.matmul %49, %4, %cst_23 {dimension_numbers = #tpu.dot_dimension_numbers<[1], [0], [0], [1], [0, 0, 1, 1], [], []>} : vector<2x32xf32>, vector<32x32xf32>, vector<2x32xf32> -> vector<2x32xf32>
    %51 = arith.addf %50, %43 : vector<2x32xf32>
    %52 = math.tanh %51 : vector<2x32xf32>
    %cst_24 = arith.constant 1.000000e-01 : f32
    %53 = vector.broadcast %cst_24 : f32 to vector<2x32xf32>
    %54 = arith.mulf %53, %52 : vector<2x32xf32>
    %55 = arith.addf %49, %54 : vector<2x32xf32>
    %cst_25 = arith.constant dense<0.000000e+00> : vector<2x32xf32>
    %56 = tpu.matmul %55, %4, %cst_25 {dimension_numbers = #tpu.dot_dimension_numbers<[1], [0], [0], [1], [0, 0, 1, 1], [], []>} : vector<2x32xf32>, vector<32x32xf32>, vector<2x32xf32> -> vector<2x32xf32>
    %57 = arith.addf %56, %43 : vector<2x32xf32>
    %58 = math.tanh %57 : vector<2x32xf32>
    %cst_26 = arith.constant 1.000000e-01 : f32
    %59 = vector.broadcast %cst_26 : f32 to vector<2x32xf32>
    %60 = arith.mulf %59, %58 : vector<2x32xf32>
    %61 = arith.addf %55, %60 : vector<2x32xf32>
    %cst_27 = arith.constant dense<0.000000e+00> : vector<2x32xf32>
    %62 = tpu.matmul %61, %4, %cst_27 {dimension_numbers = #tpu.dot_dimension_numbers<[1], [0], [0], [1], [0, 0, 1, 1], [], []>} : vector<2x32xf32>, vector<32x32xf32>, vector<2x32xf32> -> vector<2x32xf32>
    %63 = arith.addf %62, %43 : vector<2x32xf32>
    %64 = math.tanh %63 : vector<2x32xf32>
    %cst_28 = arith.constant 1.000000e-01 : f32
    %65 = vector.broadcast %cst_28 : f32 to vector<2x32xf32>
    %66 = arith.mulf %65, %64 : vector<2x32xf32>
    %67 = arith.addf %61, %66 : vector<2x32xf32>
    %c8_i32 = arith.constant 8 : i32
    %68 = arith.muli %c0_i32, %c8_i32 : i32
    %69 = tpu.assume_multiple %68, 8 : i32
    %70 = tpu.concatenate %19, %49, %55, %61 in 0 : vector<2x32xf32>, vector<2x32xf32>, vector<2x32xf32>, vector<2x32xf32> -> vector<8x32xf32>
    %71 = arith.index_cast %69 : i32 to index
    %c0_29 = arith.constant 0 : index
    %72 = vector.load %arg5[%71, %c0_29] : memref<48x32xf32, #tpu.memory_space<vmem>>, vector<8x32xf32>
    tpu.vector_store %arg5[%71, %c0_29], %70 {strides = array<i32>} : memref<48x32xf32, #tpu.memory_space<vmem>>, vector<8x32xf32>,
    %c1_i32 = arith.constant 1 : i32
    %cst_30 = arith.constant dense<0.000000e+00> : vector<2x32xf32>
    %73 = tpu.matmul %67, %4, %cst_30 {dimension_numbers = #tpu.dot_dimension_numbers<[1], [0], [0], [1], [0, 0, 1, 1], [], []>} : vector<2x32xf32>, vector<32x32xf32>, vector<2x32xf32> -> vector<2x32xf32>
    %74 = arith.addf %73, %43 : vector<2x32xf32>
    %75 = math.tanh %74 : vector<2x32xf32>
    %cst_31 = arith.constant 1.000000e-01 : f32
    %76 = vector.broadcast %cst_31 : f32 to vector<2x32xf32>
    %77 = arith.mulf %76, %75 : vector<2x32xf32>
    %78 = arith.addf %67, %77 : vector<2x32xf32>
    %cst_32 = arith.constant dense<0.000000e+00> : vector<2x32xf32>
    %79 = tpu.matmul %78, %4, %cst_32 {dimension_numbers = #tpu.dot_dimension_numbers<[1], [0], [0], [1], [0, 0, 1, 1], [], []>} : vector<2x32xf32>, vector<32x32xf32>, vector<2x32xf32> -> vector<2x32xf32>
    %80 = arith.addf %79, %43 : vector<2x32xf32>
    %81 = math.tanh %80 : vector<2x32xf32>
    %cst_33 = arith.constant 1.000000e-01 : f32
    %82 = vector.broadcast %cst_33 : f32 to vector<2x32xf32>
    %83 = arith.mulf %82, %81 : vector<2x32xf32>
    %84 = arith.addf %78, %83 : vector<2x32xf32>
    %cst_34 = arith.constant dense<0.000000e+00> : vector<2x32xf32>
    %85 = tpu.matmul %84, %4, %cst_34 {dimension_numbers = #tpu.dot_dimension_numbers<[1], [0], [0], [1], [0, 0, 1, 1], [], []>} : vector<2x32xf32>, vector<32x32xf32>, vector<2x32xf32> -> vector<2x32xf32>
    %86 = arith.addf %85, %43 : vector<2x32xf32>
    %87 = math.tanh %86 : vector<2x32xf32>
    %cst_35 = arith.constant 1.000000e-01 : f32
    %88 = vector.broadcast %cst_35 : f32 to vector<2x32xf32>
    %89 = arith.mulf %88, %87 : vector<2x32xf32>
    %90 = arith.addf %84, %89 : vector<2x32xf32>
    %cst_36 = arith.constant dense<0.000000e+00> : vector<2x32xf32>
    %91 = tpu.matmul %90, %4, %cst_36 {dimension_numbers = #tpu.dot_dimension_numbers<[1], [0], [0], [1], [0, 0, 1, 1], [], []>} : vector<2x32xf32>, vector<32x32xf32>, vector<2x32xf32> -> vector<2x32xf32>
    %92 = arith.addf %91, %43 : vector<2x32xf32>
    %93 = math.tanh %92 : vector<2x32xf32>
    %cst_37 = arith.constant 1.000000e-01 : f32
    %94 = vector.broadcast %cst_37 : f32 to vector<2x32xf32>
    %95 = arith.mulf %94, %93 : vector<2x32xf32>
    %96 = arith.addf %90, %95 : vector<2x32xf32>
    %c8_i32_38 = arith.constant 8 : i32
    %97 = arith.muli %c1_i32, %c8_i32_38 : i32
    %98 = tpu.assume_multiple %97, 8 : i32
    %99 = tpu.concatenate %67, %78, %84, %90 in 0 : vector<2x32xf32>, vector<2x32xf32>, vector<2x32xf32>, vector<2x32xf32> -> vector<8x32xf32>
    %100 = arith.index_cast %98 : i32 to index
    %c0_39 = arith.constant 0 : index
    %101 = vector.load %arg5[%100, %c0_39] : memref<48x32xf32, #tpu.memory_space<vmem>>, vector<8x32xf32>
    tpu.vector_store %arg5[%100, %c0_39], %99 {strides = array<i32>} : memref<48x32xf32, #tpu.memory_space<vmem>>, vector<8x32xf32>,
    %c2_i32 = arith.constant 2 : i32
    %cst_40 = arith.constant dense<0.000000e+00> : vector<2x32xf32>
    %102 = tpu.matmul %96, %4, %cst_40 {dimension_numbers = #tpu.dot_dimension_numbers<[1], [0], [0], [1], [0, 0, 1, 1], [], []>} : vector<2x32xf32>, vector<32x32xf32>, vector<2x32xf32> -> vector<2x32xf32>
    %103 = arith.addf %102, %43 : vector<2x32xf32>
    %104 = math.tanh %103 : vector<2x32xf32>
    %cst_41 = arith.constant 1.000000e-01 : f32
    %105 = vector.broadcast %cst_41 : f32 to vector<2x32xf32>
    %106 = arith.mulf %105, %104 : vector<2x32xf32>
    %107 = arith.addf %96, %106 : vector<2x32xf32>
    %cst_42 = arith.constant dense<0.000000e+00> : vector<2x32xf32>
    %108 = tpu.matmul %107, %4, %cst_42 {dimension_numbers = #tpu.dot_dimension_numbers<[1], [0], [0], [1], [0, 0, 1, 1], [], []>} : vector<2x32xf32>, vector<32x32xf32>, vector<2x32xf32> -> vector<2x32xf32>
    %109 = arith.addf %108, %43 : vector<2x32xf32>
    %110 = math.tanh %109 : vector<2x32xf32>
    %cst_43 = arith.constant 1.000000e-01 : f32
    %111 = vector.broadcast %cst_43 : f32 to vector<2x32xf32>
    %112 = arith.mulf %111, %110 : vector<2x32xf32>
    %113 = arith.addf %107, %112 : vector<2x32xf32>
    %cst_44 = arith.constant dense<0.000000e+00> : vector<2x32xf32>
    %114 = tpu.matmul %113, %4, %cst_44 {dimension_numbers = #tpu.dot_dimension_numbers<[1], [0], [0], [1], [0, 0, 1, 1], [], []>} : vector<2x32xf32>, vector<32x32xf32>, vector<2x32xf32> -> vector<2x32xf32>
    %115 = arith.addf %114, %43 : vector<2x32xf32>
    %116 = math.tanh %115 : vector<2x32xf32>
    %cst_45 = arith.constant 1.000000e-01 : f32
    %117 = vector.broadcast %cst_45 : f32 to vector<2x32xf32>
    %118 = arith.mulf %117, %116 : vector<2x32xf32>
    %119 = arith.addf %113, %118 : vector<2x32xf32>
    %cst_46 = arith.constant dense<0.000000e+00> : vector<2x32xf32>
    %120 = tpu.matmul %119, %4, %cst_46 {dimension_numbers = #tpu.dot_dimension_numbers<[1], [0], [0], [1], [0, 0, 1, 1], [], []>} : vector<2x32xf32>, vector<32x32xf32>, vector<2x32xf32> -> vector<2x32xf32>
    %121 = arith.addf %120, %43 : vector<2x32xf32>
    %122 = math.tanh %121 : vector<2x32xf32>
    %cst_47 = arith.constant 1.000000e-01 : f32
    %123 = vector.broadcast %cst_47 : f32 to vector<2x32xf32>
    %124 = arith.mulf %123, %122 : vector<2x32xf32>
    %125 = arith.addf %119, %124 : vector<2x32xf32>
    %c8_i32_48 = arith.constant 8 : i32
    %126 = arith.muli %c2_i32, %c8_i32_48 : i32
    %127 = tpu.assume_multiple %126, 8 : i32
    %128 = tpu.concatenate %96, %107, %113, %119 in 0 : vector<2x32xf32>, vector<2x32xf32>, vector<2x32xf32>, vector<2x32xf32> -> vector<8x32xf32>
    %129 = arith.index_cast %127 : i32 to index
    %c0_49 = arith.constant 0 : index
    %130 = vector.load %arg5[%129, %c0_49] : memref<48x32xf32, #tpu.memory_space<vmem>>, vector<8x32xf32>
    tpu.vector_store %arg5[%129, %c0_49], %128 {strides = array<i32>} : memref<48x32xf32, #tpu.memory_space<vmem>>, vector<8x32xf32>,
    %c3_i32 = arith.constant 3 : i32
    %cst_50 = arith.constant dense<0.000000e+00> : vector<2x32xf32>
    %131 = tpu.matmul %125, %4, %cst_50 {dimension_numbers = #tpu.dot_dimension_numbers<[1], [0], [0], [1], [0, 0, 1, 1], [], []>} : vector<2x32xf32>, vector<32x32xf32>, vector<2x32xf32> -> vector<2x32xf32>
    %132 = arith.addf %131, %43 : vector<2x32xf32>
    %133 = math.tanh %132 : vector<2x32xf32>
    %cst_51 = arith.constant 1.000000e-01 : f32
    %134 = vector.broadcast %cst_51 : f32 to vector<2x32xf32>
    %135 = arith.mulf %134, %133 : vector<2x32xf32>
    %136 = arith.addf %125, %135 : vector<2x32xf32>
    %cst_52 = arith.constant dense<0.000000e+00> : vector<2x32xf32>
    %137 = tpu.matmul %136, %4, %cst_52 {dimension_numbers = #tpu.dot_dimension_numbers<[1], [0], [0], [1], [0, 0, 1, 1], [], []>} : vector<2x32xf32>, vector<32x32xf32>, vector<2x32xf32> -> vector<2x32xf32>
    %138 = arith.addf %137, %43 : vector<2x32xf32>
    %139 = math.tanh %138 : vector<2x32xf32>
    %cst_53 = arith.constant 1.000000e-01 : f32
    %140 = vector.broadcast %cst_53 : f32 to vector<2x32xf32>
    %141 = arith.mulf %140, %139 : vector<2x32xf32>
    %142 = arith.addf %136, %141 : vector<2x32xf32>
    %cst_54 = arith.constant dense<0.000000e+00> : vector<2x32xf32>
    %143 = tpu.matmul %142, %4, %cst_54 {dimension_numbers = #tpu.dot_dimension_numbers<[1], [0], [0], [1], [0, 0, 1, 1], [], []>} : vector<2x32xf32>, vector<32x32xf32>, vector<2x32xf32> -> vector<2x32xf32>
    %144 = arith.addf %143, %43 : vector<2x32xf32>
    %145 = math.tanh %144 : vector<2x32xf32>
    %cst_55 = arith.constant 1.000000e-01 : f32
    %146 = vector.broadcast %cst_55 : f32 to vector<2x32xf32>
    %147 = arith.mulf %146, %145 : vector<2x32xf32>
    %148 = arith.addf %142, %147 : vector<2x32xf32>
    %cst_56 = arith.constant dense<0.000000e+00> : vector<2x32xf32>
    %149 = tpu.matmul %148, %4, %cst_56 {dimension_numbers = #tpu.dot_dimension_numbers<[1], [0], [0], [1], [0, 0, 1, 1], [], []>} : vector<2x32xf32>, vector<32x32xf32>, vector<2x32xf32> -> vector<2x32xf32>
    %150 = arith.addf %149, %43 : vector<2x32xf32>
    %151 = math.tanh %150 : vector<2x32xf32>
    %cst_57 = arith.constant 1.000000e-01 : f32
    %152 = vector.broadcast %cst_57 : f32 to vector<2x32xf32>
    %153 = arith.mulf %152, %151 : vector<2x32xf32>
    %154 = arith.addf %148, %153 : vector<2x32xf32>
    %c8_i32_58 = arith.constant 8 : i32
    %155 = arith.muli %c3_i32, %c8_i32_58 : i32
    %156 = tpu.assume_multiple %155, 8 : i32
    %157 = tpu.concatenate %125, %136, %142, %148 in 0 : vector<2x32xf32>, vector<2x32xf32>, vector<2x32xf32>, vector<2x32xf32> -> vector<8x32xf32>
    %158 = arith.index_cast %156 : i32 to index
    %c0_59 = arith.constant 0 : index
    %159 = vector.load %arg5[%158, %c0_59] : memref<48x32xf32, #tpu.memory_space<vmem>>, vector<8x32xf32>
    tpu.vector_store %arg5[%158, %c0_59], %157 {strides = array<i32>} : memref<48x32xf32, #tpu.memory_space<vmem>>, vector<8x32xf32>,
    %c4_i32 = arith.constant 4 : i32
    %cst_60 = arith.constant dense<0.000000e+00> : vector<2x32xf32>
    %160 = tpu.matmul %154, %4, %cst_60 {dimension_numbers = #tpu.dot_dimension_numbers<[1], [0], [0], [1], [0, 0, 1, 1], [], []>} : vector<2x32xf32>, vector<32x32xf32>, vector<2x32xf32> -> vector<2x32xf32>
    %161 = arith.addf %160, %43 : vector<2x32xf32>
    %162 = math.tanh %161 : vector<2x32xf32>
    %cst_61 = arith.constant 1.000000e-01 : f32
    %163 = vector.broadcast %cst_61 : f32 to vector<2x32xf32>
    %164 = arith.mulf %163, %162 : vector<2x32xf32>
    %165 = arith.addf %154, %164 : vector<2x32xf32>
    %cst_62 = arith.constant dense<0.000000e+00> : vector<2x32xf32>
    %166 = tpu.matmul %165, %4, %cst_62 {dimension_numbers = #tpu.dot_dimension_numbers<[1], [0], [0], [1], [0, 0, 1, 1], [], []>} : vector<2x32xf32>, vector<32x32xf32>, vector<2x32xf32> -> vector<2x32xf32>
    %167 = arith.addf %166, %43 : vector<2x32xf32>
    %168 = math.tanh %167 : vector<2x32xf32>
    %cst_63 = arith.constant 1.000000e-01 : f32
    %169 = vector.broadcast %cst_63 : f32 to vector<2x32xf32>
    %170 = arith.mulf %169, %168 : vector<2x32xf32>
    %171 = arith.addf %165, %170 : vector<2x32xf32>
    %cst_64 = arith.constant dense<0.000000e+00> : vector<2x32xf32>
    %172 = tpu.matmul %171, %4, %cst_64 {dimension_numbers = #tpu.dot_dimension_numbers<[1], [0], [0], [1], [0, 0, 1, 1], [], []>} : vector<2x32xf32>, vector<32x32xf32>, vector<2x32xf32> -> vector<2x32xf32>
    %173 = arith.addf %172, %43 : vector<2x32xf32>
    %174 = math.tanh %173 : vector<2x32xf32>
    %cst_65 = arith.constant 1.000000e-01 : f32
    %175 = vector.broadcast %cst_65 : f32 to vector<2x32xf32>
    %176 = arith.mulf %175, %174 : vector<2x32xf32>
    %177 = arith.addf %171, %176 : vector<2x32xf32>
    %cst_66 = arith.constant dense<0.000000e+00> : vector<2x32xf32>
    %178 = tpu.matmul %177, %4, %cst_66 {dimension_numbers = #tpu.dot_dimension_numbers<[1], [0], [0], [1], [0, 0, 1, 1], [], []>} : vector<2x32xf32>, vector<32x32xf32>, vector<2x32xf32> -> vector<2x32xf32>
    %179 = arith.addf %178, %43 : vector<2x32xf32>
    %180 = math.tanh %179 : vector<2x32xf32>
    %cst_67 = arith.constant 1.000000e-01 : f32
    %181 = vector.broadcast %cst_67 : f32 to vector<2x32xf32>
    %182 = arith.mulf %181, %180 : vector<2x32xf32>
    %183 = arith.addf %177, %182 : vector<2x32xf32>
    %c8_i32_68 = arith.constant 8 : i32
    %184 = arith.muli %c4_i32, %c8_i32_68 : i32
    %185 = tpu.assume_multiple %184, 8 : i32
    %186 = tpu.concatenate %154, %165, %171, %177 in 0 : vector<2x32xf32>, vector<2x32xf32>, vector<2x32xf32>, vector<2x32xf32> -> vector<8x32xf32>
    %187 = arith.index_cast %185 : i32 to index
    %c0_69 = arith.constant 0 : index
    %188 = vector.load %arg5[%187, %c0_69] : memref<48x32xf32, #tpu.memory_space<vmem>>, vector<8x32xf32>
    tpu.vector_store %arg5[%187, %c0_69], %186 {strides = array<i32>} : memref<48x32xf32, #tpu.memory_space<vmem>>, vector<8x32xf32>,
    %c5_i32 = arith.constant 5 : i32
    %cst_70 = arith.constant dense<0.000000e+00> : vector<2x32xf32>
    %189 = tpu.matmul %183, %4, %cst_70 {dimension_numbers = #tpu.dot_dimension_numbers<[1], [0], [0], [1], [0, 0, 1, 1], [], []>} : vector<2x32xf32>, vector<32x32xf32>, vector<2x32xf32> -> vector<2x32xf32>
    %190 = arith.addf %189, %43 : vector<2x32xf32>
    %191 = math.tanh %190 : vector<2x32xf32>
    %cst_71 = arith.constant 1.000000e-01 : f32
    %192 = vector.broadcast %cst_71 : f32 to vector<2x32xf32>
    %193 = arith.mulf %192, %191 : vector<2x32xf32>
    %194 = arith.addf %183, %193 : vector<2x32xf32>
    %cst_72 = arith.constant dense<0.000000e+00> : vector<2x32xf32>
    %195 = tpu.matmul %194, %4, %cst_72 {dimension_numbers = #tpu.dot_dimension_numbers<[1], [0], [0], [1], [0, 0, 1, 1], [], []>} : vector<2x32xf32>, vector<32x32xf32>, vector<2x32xf32> -> vector<2x32xf32>
    %196 = arith.addf %195, %43 : vector<2x32xf32>
    %197 = math.tanh %196 : vector<2x32xf32>
    %cst_73 = arith.constant 1.000000e-01 : f32
    %198 = vector.broadcast %cst_73 : f32 to vector<2x32xf32>
    %199 = arith.mulf %198, %197 : vector<2x32xf32>
    %200 = arith.addf %194, %199 : vector<2x32xf32>
    %cst_74 = arith.constant dense<0.000000e+00> : vector<2x32xf32>
    %201 = tpu.matmul %200, %4, %cst_74 {dimension_numbers = #tpu.dot_dimension_numbers<[1], [0], [0], [1], [0, 0, 1, 1], [], []>} : vector<2x32xf32>, vector<32x32xf32>, vector<2x32xf32> -> vector<2x32xf32>
    %202 = arith.addf %201, %43 : vector<2x32xf32>
    %203 = math.tanh %202 : vector<2x32xf32>
    %cst_75 = arith.constant 1.000000e-01 : f32
    %204 = vector.broadcast %cst_75 : f32 to vector<2x32xf32>
    %205 = arith.mulf %204, %203 : vector<2x32xf32>
    %206 = arith.addf %200, %205 : vector<2x32xf32>
    %cst_76 = arith.constant dense<0.000000e+00> : vector<2x32xf32>
    %207 = tpu.matmul %206, %4, %cst_76 {dimension_numbers = #tpu.dot_dimension_numbers<[1], [0], [0], [1], [0, 0, 1, 1], [], []>} : vector<2x32xf32>, vector<32x32xf32>, vector<2x32xf32> -> vector<2x32xf32>
    %208 = arith.addf %207, %43 : vector<2x32xf32>
    %209 = math.tanh %208 : vector<2x32xf32>
    %cst_77 = arith.constant 1.000000e-01 : f32
    %210 = vector.broadcast %cst_77 : f32 to vector<2x32xf32>
    %211 = arith.mulf %210, %209 : vector<2x32xf32>
    %212 = arith.addf %206, %211 : vector<2x32xf32>
    %c8_i32_78 = arith.constant 8 : i32
    %213 = arith.muli %c5_i32, %c8_i32_78 : i32
    %214 = tpu.assume_multiple %213, 8 : i32
    %215 = tpu.concatenate %183, %194, %200, %206 in 0 : vector<2x32xf32>, vector<2x32xf32>, vector<2x32xf32>, vector<2x32xf32> -> vector<8x32xf32>
    %216 = arith.index_cast %214 : i32 to index
    %c0_79 = arith.constant 0 : index
    %217 = vector.load %arg5[%216, %c0_79] : memref<48x32xf32, #tpu.memory_space<vmem>>, vector<8x32xf32>
    tpu.vector_store %arg5[%216, %c0_79], %215 {strides = array<i32>} : memref<48x32xf32, #tpu.memory_space<vmem>>, vector<8x32xf32>,
    %c6_i32 = arith.constant 6 : i32
    %c0_80 = arith.constant 0 : index
    %c0_81 = arith.constant 0 : index
    %218 = vector.load %arg5[%c0_80, %c0_81] : memref<48x32xf32, #tpu.memory_space<vmem>>, vector<48x32xf32>
    %cst_82 = arith.constant dense<0.000000e+00> : vector<48x16xf32>
    %219 = tpu.matmul %218, %6, %cst_82 {dimension_numbers = #tpu.dot_dimension_numbers<[1], [0], [0], [1], [0, 0, 1, 1], [], []>} : vector<48x32xf32>, vector<32x16xf32>, vector<48x16xf32> -> vector<48x16xf32>
    %220 = vector.broadcast %7 : vector<1x16xf32> to vector<48x16xf32>
    %221 = arith.addf %219, %220 : vector<48x16xf32>
    %222 = vector.extract_strided_slice %221 {offsets = [0, 0], sizes = [48, 8], strides = [1, 1]} : vector<48x16xf32> to vector<48x8xf32>
    %223 = vector.extract_strided_slice %221 {offsets = [0, 8], sizes = [48, 8], strides = [1, 1]} : vector<48x16xf32> to vector<48x8xf32>
    %c0_83 = arith.constant 0 : index
    %c0_84 = arith.constant 0 : index
    %224 = vector.load %arg1[%c0_83, %c0_84] : memref<64x32xf32, #tpu.memory_space<vmem>>, vector<48x8xf32>
    %225 = arith.subf %224, %222 : vector<48x8xf32>
    %226 = arith.mulf %225, %225 : vector<48x8xf32>
    %cst_85 = arith.constant 0.000000e+00 : f32
    %227 = vector.broadcast %cst_85 : f32 to vector<48x8xf32>
    %228 = arith.subf %227, %223 : vector<48x8xf32>
    %229 = math.exp %228 : vector<48x8xf32>
    %230 = arith.mulf %226, %229 : vector<48x8xf32>
    %231 = arith.addf %223, %230 : vector<48x8xf32>
    %cst_86 = arith.constant 1.83787704 : f32
    %232 = vector.broadcast %cst_86 : f32 to vector<48x8xf32>
    %233 = arith.addf %231, %232 : vector<48x8xf32>
    %cst_87 = arith.constant 5.000000e-01 : f32
    %234 = vector.broadcast %cst_87 : f32 to vector<48x8xf32>
    %235 = arith.mulf %234, %233 : vector<48x8xf32>
    %236 = vector.shape_cast %235 : vector<48x8xf32> to vector<1x48x8xf32>
    %cst_88 = arith.constant dense<0.000000e+00> : vector<1xf32>
    %237 = vector.multi_reduction <add>, %236, %cst_88 [1, 2] : vector<1x48x8xf32> to vector<1xf32>
    %238 = vector.shape_cast %237 : vector<1xf32> to vector<1x1x1xf32>
    %239 = vector.extract %238[0, 0, 0] : f32 from vector<1x1x1xf32>
    %cst_89 = arith.constant 0.020833334 : f32
    %240 = arith.mulf %239, %cst_89 : f32
    %c0_90 = arith.constant 0 : index
    %c0_91 = arith.constant 0 : index
    %241 = memref.load %arg3[%c0_90, %c0_91] : memref<1x1xf32, #tpu.memory_space<smem>>
    memref.store %240, %arg3[%c0_90, %c0_91] : memref<1x1xf32, #tpu.memory_space<smem>>
    return
  }
}

</mosaic_0001>

<bundles_post_ra>
// kernel: tpu_custom_call.1
= control target key start
LH: loop header
LB: loop body
LE: loop exit
PB: predicated region body
PF: predicated region fallthrough
CT: control target
= control target key end

     0   :  { %10 = vsyncpa [#allocation5], 0  ;;  %s3418_s0 = inlined_call_operand.vmem [shape: f32[1,2], index: 0, kind: input, shape index: {}]   ;;  %s3419_s1 = inlined_call_operand.vmem [shape: f32[64,32], index: 1, kind: input, shape index: {}]   ;;  %s3420_s2 = inlined_call_operand.vmem [shape: f32[96,64], index: 2, kind: input, shape index: {}]   ;;  %s3421_s3 = inlined_call_operand.hbm [shape: f32[1,1], index: 3, kind: output, shape index: {0}]   ;;  %s3422_s4 = inlined_call_operand.hbm [shape: f32[1,1], index: 4, kind: output, shape index: {1}]  }
   0x1   :  { %11 = vsyncpa [#allocation4], 0 }
   0x2   :  { %12 = vsyncpa [#allocation8], 0  ;;  %s19_s17 = sshll.u32 %s3418_s0, 4  ;;  %s20_s17 = int_to_ptr.vmem [resolvable:$true] %s19_s17 }
   0x3   :  { %s2963_s18 = scalar_lea.vmem %s20_s17, 16  ;;  %p2968_p1 = scmp.lt.s32.totalorder %s20_s17, %s20_s17 }
   0x4   :  { %p2964_p0 = scmp.ne.s32.totalorder %s20_s17, %s2963_s18  ;;  %p2969_p2 = scmp.lt.s32.totalorder %s2963_s18, %s2963_s18 }
   0x6   :  { %p2970_p3 = por %p2969_p2, %p2968_p1 }
   0x8   :  { %p2971_p4 = pnand %p2970_p3, %p2964_p0 }
   0xa   :  { %2974 = shalt.err (!%p2971_p4)
}
   0xb   :  { %s3001_s19 = smov [#allocation3]  }
   0xc   :  { %22 = dma.vmem_to_smem %s20_s17, 16, %s3001_s19, [#allocation5]  }
   0xd   :  { %2995 = dma.done.wait [#allocation5], 16  }
   0xe   :  { %2996 = vsyncadd [#allocation5], 4294967280 }
   0xf   :  { %30 = sfence }
  0x10   :  { %v33_v0 = vld [vmem:[%s3420_s2] sm:$0xff]  ;;  %v45_v1 = vld [vmem:[%s3419_s1 + $0x30] sm:$0x3]  ;;  %vm51_vm0 = vcmask 64512   ;;  %v3002_v2 = vmov 0.0   ;;  %vm3003_vm1 = vmmov 0  }
  0x11   :  { %2462 = vmatprep.subr.mxu1 %v3002_v2  ;;  %2464 = vmatprep.mubr.msk.f32.mxu1 %vm3003_vm1, %v3002_v2  ;;  %v35_v3 = vld [vmem:[%s3420_s2 + $0x10] sm:$0xff]  ;;  %v36_v4 = vld [vmem:[%s3420_s2 + $0x18] sm:$0xff]  ;;  %v3004_v5 = vmov 0.0|0.0   ;;  %v2301_v7 = vld [vmem:[%s3420_s2 + $0x8] ss:$0 sm:$0xff]  ;;  %s3005_s7 = smov 96  }
  0x12   :  { %2463 = vmatpush3.msra.mxu1 %v33_v0  ;;  %2486 = vmatprep.mubr.msk.f32.mxu0 %vm3003_vm1, %v3002_v2  ;;  %v3060_v6 = vpack.c.bf16 %v36_v4, %v35_v3  ;;  %v37_v12 = vld [vmem:[%s3420_s2 + $0x20] sm:$0xff]  ;;  %v38_v13 = vld [vmem:[%s3420_s2 + $0x28] sm:$0xff]  ;;  %v46_v17 = vld [vmem:[%s3419_s1 + $0x38] sm:$0x3]  ;;  %vm178_vm2 = vcmask 261120   ;;  %vm489_vm3 = vcmask 1041408  }
  0x13   :  { %2465 = vmatmul.mubr.msk.f32.vlgmr.msra.gmra.mrb[0].mxu1 %vm51_vm0, %v45_v1  ;;  %2737 = vmatprep.subr.bf16.mxu1 %v3004_v5  ;;  %v3079_v14 = vpack.c.bf16 %v38_v13, %v37_v12  ;;  %v3100_v21 = vld [vmem:[%s3420_s2 + $0x30] ss:$0 sm:$0xff]  ;;  %vm491_vm4 = vcmask 1043456   ;;  %vm493_vm5 = vcmask 1045504   ;;  %s3336_s22 = sld [smem:[#allocation3 + $0x1]]  ;;  %s31_s27 = sld [smem:[#allocation3]] }
  0x14   :  { %2475 = vmatprep.mubr.msk.f32.mxu1 %vm3003_vm1, %v3002_v2  ;;  %2743 = vmatprep.subr.bf16.mxu0 %v3004_v5  ;;  %s3007_s6 = smov 8   ;;  %s3008_s8 = smov 32   ;;  %vm160_vm6 = vcmask 254976  }
  0x15   :  { %2739 = vmatpush3.bf16.msra.mxu1 %v3060_v6  ;;  %2745 = vmatpush3.bf16.msra.mxu0 %v3060_v6  ;;  %s2975_s18 = scalar_lea.hbm %s3421_s3, 16 }
  0x16   :  { %2740 = vmatprep.subr.bf16.mxu1 %v3004_v5  ;;  %2746 = vmatprep.subr.bf16.mxu0 %v3004_v5  ;;  %p2976_p5 = scmp.ne.s32.totalorder %s3421_s3, %s2975_s18  ;;  %p2979_p6 = scmp.lt.u32.totalorder %s2975_s18, %s3421_s3 }
  0x18   :  { %p2981_p7 = pnand %p2979_p6, %p2976_p5 }
  0x19   :  { %2742 = vmatpush3.bf16.msra.mxu1 %v3079_v14  ;;  %2748 = vmatpush3.bf16.msra.mxu0 %v3079_v14  ;;  %s146_s23 = ssub.f32 0.0, %s3336_s22 }
  0x1a   :  { %2749 = vmatprep.subr.bf16.mxu1 %v3004_v5  ;;  %2755 = vmatprep.subr.bf16.mxu0 %v3004_v5 }
  0xe6   :  { %v121_v8 = vpop.f32.mrb[0].mxu1 }
  0xe7   :  { %v3070_v9 = vadd.f32 %v2301_v7, %v121_v8  ;;  %v2466_v10 = vpop.f32.mrb[1].mxu1 }
  0xe9   :  { %v125_v11 = vmul.f32 0.5, %v3070_v9 }
  0xeb   :  { %v126_v15 = vmul.f32 1.442695, %v125_v11 }
  0xed   :  { %2899 = vpow2.f32 %v126_v15 }
  0xf7   :  { %v2900_v16 = vpop.eup %2899 }
  0xf8   :  { %129 = vrot.lane.b32.xlu0 %v2900_v16, %s3005_s7 }
 0x16a   :  { %v130_v18 = vpop.permute.xlu0 %129 }
 0x16b   :  { %v132_v19 = vmul.f32 %v130_v18, %v46_v17 }
 0x16d   :  { %v133_v20 = vadd.f32 %v132_v19, %v3070_v9 }
 0x16f   :  { %2476 = vmatmul.mubr.msk.f32.vlgmr.msra.gmra.mrb[2].mxu1 %vm178_vm2, %v133_v20 }
 0x170   :  { %2751 = vmatpush3.bf16.msra.mxu1 %v3060_v6  ;;  %2497 = vmatprep.mubr.msk.f32.mxu1 %vm3003_vm1, %v3002_v2 }
 0x171   :  { %2752 = vmatprep.subr.bf16.mxu1 %v3004_v5 }
 0x174   :  { %2754 = vmatpush3.bf16.msra.mxu1 %v3079_v14 }
 0x175   :  { %2761 = vmatprep.subr.bf16.mxu1 %v3004_v5 }
 0x242   :  { %v248_v22 = vpop.f32.mrb[2].mxu1 }
 0x243   :  { %v249_v23 = vadd.f32 %v3100_v21, %v248_v22  ;;  %v2477_v24 = vpop.f32.mrb[3].mxu1 }
 0x245   :  { %2901 = vtanh.f32 %v249_v23 }
 0x24f   :  { %v2902_v25 = vpop.eup %2901 }
 0x250   :  { %v253_v26 = vmul.f32 0.1, %v2902_v25 }
 0x252   :  { %v254_v27 = vadd.f32 %v253_v26, %v133_v20 }
 0x254   :  { %2487 = vmatmul.mubr.msk.f32.vlgmr.msra.gmra.mrb[0].mxu0 %vm178_vm2, %v254_v27  ;;  %v483_v38 = vrot.slane %v254_v27, 6 }
 0x255   :  { %2757 = vmatpush3.bf16.msra.mxu0 %v3060_v6  ;;  %2508 = vmatprep.mubr.msk.f32.mxu0 %vm3003_vm1, %v3002_v2 }
 0x256   :  { %2758 = vmatprep.subr.bf16.mxu0 %v3004_v5  ;;  %v490_v42 = vsel %vm489_vm3, %v133_v20, %v483_v38 }
 0x259   :  { %2760 = vmatpush3.bf16.msra.mxu0 %v3079_v14 }
 0x25a   :  { %2767 = vmatprep.subr.bf16.mxu0 %v3004_v5 }
 0x327   :  { %v324_v28 = vpop.f32.mrb[0].mxu0 }
 0x328   :  { %v325_v29 = vadd.f32 %v3100_v21, %v324_v28  ;;  %v2488_v30 = vpop.f32.mrb[1].mxu0 }
 0x32a   :  { %2903 = vtanh.f32 %v325_v29 }
 0x334   :  { %v2904_v31 = vpop.eup %2903 }
 0x335   :  { %v329_v32 = vmul.f32 0.1, %v2904_v31 }
 0x337   :  { %v330_v33 = vadd.f32 %v329_v32, %v254_v27 }
 0x339   :  { %2498 = vmatmul.mubr.msk.f32.vlgmr.msra.gmra.mrb[4].mxu1 %vm178_vm2, %v330_v33  ;;  %v485_v40 = vrot.slane %v330_v33, 4 }
 0x33a   :  { %2763 = vmatpush3.bf16.msra.mxu1 %v3060_v6  ;;  %2519 = vmatprep.mubr.msk.f32.mxu1 %vm3003_vm1, %v3002_v2 }
 0x33b   :  { %2764 = vmatprep.subr.bf16.mxu1 %v3004_v5  ;;  %v492_v44 = vsel %vm491_vm4, %v490_v42, %v485_v40 }
 0x33e   :  { %2766 = vmatpush3.bf16.msra.mxu1 %v3079_v14 }
 0x33f   :  { %2773 = vmatprep.subr.bf16.mxu1 %v3004_v5 }
 0x40c   :  { %v400_v34 = vpop.f32.mrb[4].mxu1 }
 0x40d   :  { %v401_v35 = vadd.f32 %v3100_v21, %v400_v34  ;;  %v2499_v36 = vpop.f32.mrb[5].mxu1 }
 0x40f   :  { %2905 = vtanh.f32 %v401_v35 }
 0x419   :  { %v2906_v37 = vpop.eup %2905 }
 0x41a   :  { %v405_v39 = vmul.f32 0.1, %v2906_v37 }
 0x41c   :  { %v406_v41 = vadd.f32 %v405_v39, %v330_v33 }
 0x41e   :  { %v487_v43 = vrot.slane %v406_v41, 2  ;;  %2509 = vmatmul.mubr.msk.f32.vlgmr.msra.gmra.mrb[2].mxu0 %vm178_vm2, %v406_v41 }
 0x41f   :  { %2769 = vmatpush3.bf16.msra.mxu0 %v3060_v6  ;;  %2530 = vmatprep.mubr.msk.f32.mxu0 %vm3003_vm1, %v3002_v2 }
 0x420   :  { %v494_v45 = vsel %vm493_vm5, %v492_v44, %v487_v43  ;;  %2770 = vmatprep.subr.bf16.mxu0 %v3004_v5 }
 0x421   :  { %495 = vst.msk [vmem:[#allocation2] sm:$0xff] %vm178_vm2, %v494_v45 }
 0x423   :  { %2772 = vmatpush3.bf16.msra.mxu0 %v3079_v14 }
 0x424   :  { %2779 = vmatprep.subr.bf16.mxu0 %v3004_v5 }
 0x4f1   :  { %v476_v46 = vpop.f32.mrb[2].mxu0 }
 0x4f2   :  { %v477_v47 = vadd.f32 %v3100_v21, %v476_v46  ;;  %v2510_v48 = vpop.f32.mrb[3].mxu0 }
 0x4f4   :  { %2907 = vtanh.f32 %v477_v47 }
 0x4fe   :  { %v2908_v49 = vpop.eup %2907 }
 0x4ff   :  { %v481_v50 = vmul.f32 0.1, %v2908_v49 }
 0x501   :  { %v482_v51 = vadd.f32 %v481_v50, %v406_v41 }
 0x503   :  { %2520 = vmatmul.mubr.msk.f32.vlgmr.msra.gmra.mrb[6].mxu1 %vm178_vm2, %v482_v51 }
 0x504   :  { %2775 = vmatpush3.bf16.msra.mxu1 %v3060_v6  ;;  %2541 = vmatprep.mubr.msk.f32.mxu1 %vm3003_vm1, %v3002_v2 }
 0x505   :  { %2776 = vmatprep.subr.bf16.mxu1 %v3004_v5 }
 0x508   :  { %2778 = vmatpush3.bf16.msra.mxu1 %v3079_v14 }
 0x509   :  { %2785 = vmatprep.subr.bf16.mxu1 %v3004_v5 }
 0x5d6   :  { %v565_v52 = vpop.f32.mrb[6].mxu1 }
 0x5d7   :  { %v566_v53 = vadd.f32 %v3100_v21, %v565_v52  ;;  %v2521_v54 = vpop.f32.mrb[7].mxu1 }
 0x5d9   :  { %2909 = vtanh.f32 %v566_v53 }
 0x5e3   :  { %v2910_v55 = vpop.eup %2909 }
 0x5e4   :  { %v570_v56 = vmul.f32 0.1, %v2910_v55 }
 0x5e6   :  { %v571_v57 = vadd.f32 %v570_v56, %v482_v51 }
 0x5e8   :  { %2531 = vmatmul.mubr.msk.f32.vlgmr.msra.gmra.mrb[4].mxu0 %vm178_vm2, %v571_v57  ;;  %v800_v7 = vrot.slane %v571_v57, 6 }
 0x5e9   :  { %2781 = vmatpush3.bf16.msra.mxu0 %v3060_v6  ;;  %2552 = vmatprep.mubr.msk.f32.mxu0 %vm3003_vm1, %v3002_v2 }
 0x5ea   :  { %2782 = vmatprep.subr.bf16.mxu0 %v3004_v5  ;;  %v806_v12 = vsel %vm489_vm3, %v482_v51, %v800_v7 }
 0x5ed   :  { %2784 = vmatpush3.bf16.msra.mxu0 %v3079_v14 }
 0x5ee   :  { %2791 = vmatprep.subr.bf16.mxu0 %v3004_v5 }
 0x6bb   :  { %v641_v58 = vpop.f32.mrb[4].mxu0 }
 0x6bc   :  { %v642_v59 = vadd.f32 %v3100_v21, %v641_v58  ;;  %v2532_v60 = vpop.f32.mrb[5].mxu0 }
 0x6be   :  { %2911 = vtanh.f32 %v642_v59 }
 0x6c8   :  { %v2912_v61 = vpop.eup %2911 }
 0x6c9   :  { %v646_v62 = vmul.f32 0.1, %v2912_v61 }
 0x6cb   :  { %v647_v63 = vadd.f32 %v646_v62, %v571_v57 }
 0x6cd   :  { %2542 = vmatmul.mubr.msk.f32.vlgmr.msra.gmra.mrb[8].mxu1 %vm178_vm2, %v647_v63  ;;  %v802_v10 = vrot.slane %v647_v63, 4 }
 0x6ce   :  { %2787 = vmatpush3.bf16.msra.mxu1 %v3060_v6  ;;  %2563 = vmatprep.mubr.msk.f32.mxu1 %vm3003_vm1, %v3002_v2 }
 0x6cf   :  { %2788 = vmatprep.subr.bf16.mxu1 %v3004_v5  ;;  %v807_v15 = vsel %vm491_vm4, %v806_v12, %v802_v10 }
 0x6d2   :  { %2790 = vmatpush3.bf16.msra.mxu1 %v3079_v14 }
 0x6d3   :  { %2797 = vmatprep.subr.bf16.mxu1 %v3004_v5 }
 0x7a0   :  { %v717_v0 = vpop.f32.mrb[8].mxu1 }
 0x7a1   :  { %v718_v1 = vadd.f32 %v3100_v21, %v717_v0  ;;  %v2543_v3 = vpop.f32.mrb[9].mxu1 }
 0x7a3   :  { %2913 = vtanh.f32 %v718_v1 }
 0x7ad   :  { %v2914_v4 = vpop.eup %2913 }
 0x7ae   :  { %v722_v8 = vmul.f32 0.1, %v2914_v4 }
 0x7b0   :  { %v723_v11 = vadd.f32 %v722_v8, %v647_v63 }
 0x7b2   :  { %v804_v13 = vrot.slane %v723_v11, 2  ;;  %2553 = vmatmul.mubr.msk.f32.vlgmr.msra.gmra.mrb[6].mxu0 %vm178_vm2, %v723_v11 }
 0x7b3   :  { %2793 = vmatpush3.bf16.msra.mxu0 %v3060_v6  ;;  %2574 = vmatprep.mubr.msk.f32.mxu0 %vm3003_vm1, %v3002_v2 }
 0x7b4   :  { %v808_v16 = vsel %vm493_vm5, %v807_v15, %v804_v13  ;;  %2794 = vmatprep.subr.bf16.mxu0 %v3004_v5 }
 0x7b5   :  { %810 = vst.msk [vmem:[#allocation2 + $0x8] sm:$0xff] %vm178_vm2, %v808_v16 }
 0x7b7   :  { %2796 = vmatpush3.bf16.msra.mxu0 %v3079_v14 }
 0x7b8   :  { %2803 = vmatprep.subr.bf16.mxu0 %v3004_v5 }
 0x885   :  { %v793_v17 = vpop.f32.mrb[6].mxu0 }
 0x886   :  { %v794_v18 = vadd.f32 %v3100_v21, %v793_v17  ;;  %v2554_v19 = vpop.f32.mrb[7].mxu0 }
 0x888   :  { %2915 = vtanh.f32 %v794_v18 }
 0x892   :  { %v2916_v20 = vpop.eup %2915 }
 0x893   :  { %v798_v22 = vmul.f32 0.1, %v2916_v20 }
 0x895   :  { %v799_v23 = vadd.f32 %v798_v22, %v723_v11 }
 0x897   :  { %2564 = vmatmul.mubr.msk.f32.vlgmr.msra.gmra.mrb[10].mxu1 %vm178_vm2, %v799_v23 }
 0x898   :  { %2799 = vmatpush3.bf16.msra.mxu1 %v3060_v6  ;;  %2585 = vmatprep.mubr.msk.f32.mxu1 %vm3003_vm1, %v3002_v2 }
 0x899   :  { %2800 = vmatprep.subr.bf16.mxu1 %v3004_v5 }
 0x89c   :  { %2802 = vmatpush3.bf16.msra.mxu1 %v3079_v14 }
 0x89d   :  { %2809 = vmatprep.subr.bf16.mxu1 %v3004_v5 }
 0x96a   :  { %v880_v24 = vpop.f32.mrb[10].mxu1 }
 0x96b   :  { %v881_v25 = vadd.f32 %v3100_v21, %v880_v24  ;;  %v2565_v26 = vpop.f32.mrb[11].mxu1 }
 0x96d   :  { %2917 = vtanh.f32 %v881_v25 }
 0x977   :  { %v2918_v27 = vpop.eup %2917 }
 0x978   :  { %v885_v28 = vmul.f32 0.1, %v2918_v27 }
 0x97a   :  { %v886_v29 = vadd.f32 %v885_v28, %v799_v23 }
 0x97c   :  { %2575 = vmatmul.mubr.msk.f32.vlgmr.msra.gmra.mrb[8].mxu0 %vm178_vm2, %v886_v29  ;;  %v1115_v40 = vrot.slane %v886_v29, 6 }
 0x97d   :  { %2805 = vmatpush3.bf16.msra.mxu0 %v3060_v6  ;;  %2596 = vmatprep.mubr.msk.f32.mxu0 %vm3003_vm1, %v3002_v2 }
 0x97e   :  { %2806 = vmatprep.subr.bf16.mxu0 %v3004_v5  ;;  %v1121_v44 = vsel %vm489_vm3, %v799_v23, %v1115_v40 }
 0x981   :  { %2808 = vmatpush3.bf16.msra.mxu0 %v3079_v14 }
 0x982   :  { %2815 = vmatprep.subr.bf16.mxu0 %v3004_v5 }
 0xa4f   :  { %v956_v30 = vpop.f32.mrb[8].mxu0 }
 0xa50   :  { %v957_v31 = vadd.f32 %v3100_v21, %v956_v30  ;;  %v2576_v32 = vpop.f32.mrb[9].mxu0 }
 0xa52   :  { %2919 = vtanh.f32 %v957_v31 }
 0xa5c   :  { %v2920_v33 = vpop.eup %2919 }
 0xa5d   :  { %v961_v34 = vmul.f32 0.1, %v2920_v33 }
 0xa5f   :  { %v962_v35 = vadd.f32 %v961_v34, %v886_v29 }
 0xa61   :  { %2586 = vmatmul.mubr.msk.f32.vlgmr.msra.gmra.mrb[12].mxu1 %vm178_vm2, %v962_v35  ;;  %v1117_v42 = vrot.slane %v962_v35, 4 }
 0xa62   :  { %2811 = vmatpush3.bf16.msra.mxu1 %v3060_v6  ;;  %2607 = vmatprep.mubr.msk.f32.mxu1 %vm3003_vm1, %v3002_v2 }
 0xa63   :  { %2812 = vmatprep.subr.bf16.mxu1 %v3004_v5  ;;  %v1122_v46 = vsel %vm491_vm4, %v1121_v44, %v1117_v42 }
 0xa66   :  { %2814 = vmatpush3.bf16.msra.mxu1 %v3079_v14 }
 0xa67   :  { %2821 = vmatprep.subr.bf16.mxu1 %v3004_v5 }
 0xb34   :  { %v1032_v36 = vpop.f32.mrb[12].mxu1 }
 0xb35   :  { %v1033_v37 = vadd.f32 %v3100_v21, %v1032_v36  ;;  %v2587_v38 = vpop.f32.mrb[13].mxu1 }
 0xb37   :  { %2921 = vtanh.f32 %v1033_v37 }
 0xb41   :  { %v2922_v39 = vpop.eup %2921 }
 0xb42   :  { %v1037_v41 = vmul.f32 0.1, %v2922_v39 }
 0xb44   :  { %v1038_v43 = vadd.f32 %v1037_v41, %v962_v35 }
 0xb46   :  { %v1119_v45 = vrot.slane %v1038_v43, 2  ;;  %2597 = vmatmul.mubr.msk.f32.vlgmr.msra.gmra.mrb[10].mxu0 %vm178_vm2, %v1038_v43 }
 0xb47   :  { %2817 = vmatpush3.bf16.msra.mxu0 %v3060_v6  ;;  %2618 = vmatprep.mubr.msk.f32.mxu0 %vm3003_vm1, %v3002_v2 }
 0xb48   :  { %v1123_v47 = vsel %vm493_vm5, %v1122_v46, %v1119_v45  ;;  %2818 = vmatprep.subr.bf16.mxu0 %v3004_v5 }
 0xb49   :  { %1125 = vst.msk [vmem:[#allocation2 + $0x10] sm:$0xff] %vm178_vm2, %v1123_v47 }
 0xb4b   :  { %2820 = vmatpush3.bf16.msra.mxu0 %v3079_v14 }
 0xb4c   :  { %2827 = vmatprep.subr.bf16.mxu0 %v3004_v5 }
 0xc19   :  { %v1108_v48 = vpop.f32.mrb[10].mxu0 }
 0xc1a   :  { %v1109_v49 = vadd.f32 %v3100_v21, %v1108_v48  ;;  %v2598_v50 = vpop.f32.mrb[11].mxu0 }
 0xc1c   :  { %2923 = vtanh.f32 %v1109_v49 }
 0xc26   :  { %v2924_v51 = vpop.eup %2923 }
 0xc27   :  { %v1113_v52 = vmul.f32 0.1, %v2924_v51 }
 0xc29   :  { %v1114_v53 = vadd.f32 %v1113_v52, %v1038_v43 }
 0xc2b   :  { %2608 = vmatmul.mubr.msk.f32.vlgmr.msra.gmra.mrb[14].mxu1 %vm178_vm2, %v1114_v53 }
 0xc2c   :  { %2823 = vmatpush3.bf16.msra.mxu1 %v3060_v6  ;;  %2629 = vmatprep.mubr.msk.f32.mxu1 %vm3003_vm1, %v3002_v2 }
 0xc2d   :  { %2824 = vmatprep.subr.bf16.mxu1 %v3004_v5 }
 0xc30   :  { %2826 = vmatpush3.bf16.msra.mxu1 %v3079_v14 }
 0xc31   :  { %2833 = vmatprep.subr.bf16.mxu1 %v3004_v5 }
 0xcfe   :  { %v1195_v54 = vpop.f32.mrb[14].mxu1 }
 0xcff   :  { %v1196_v55 = vadd.f32 %v3100_v21, %v1195_v54  ;;  %v2609_v56 = vpop.f32.mrb[15].mxu1 }
 0xd00   :  { %v40_v56 = vld [vmem:[%s3420_s2 + $0x38] sm:$0xff] }
 0xd01   :  { %2925 = vtanh.f32 %v1196_v55 }
 0xd0b   :  { %v2926_v57 = vpop.eup %2925 }
 0xd0c   :  { %v1200_v58 = vmul.f32 0.1, %v2926_v57  ;;  %v41_v57 = vld [vmem:[%s3420_s2 + $0x40] sm:$0xff] }
 0xd0e   :  { %v1201_v59 = vadd.f32 %v1200_v58, %v1114_v53  ;;  %v2875_v58 = vpack.c.bf16 %v41_v57, %v40_v56 }
 0xd10   :  { %2619 = vmatmul.mubr.msk.f32.vlgmr.msra.gmra.mrb[12].mxu0 %vm178_vm2, %v1201_v59  ;;  %v1430_v10 = vrot.slane %v1201_v59, 6 }
 0xd11   :  { %2829 = vmatpush3.bf16.msra.mxu0 %v3060_v6  ;;  %2640 = vmatprep.mubr.msk.f32.mxu0 %vm3003_vm1, %v3002_v2 }
 0xd12   :  { %2830 = vmatprep.subr.bf16.mxu0 %v3004_v5  ;;  %v1436_v15 = vsel %vm489_vm3, %v1114_v53, %v1430_v10 }
 0xd15   :  { %2832 = vmatpush3.bf16.msra.mxu0 %v3079_v14 }
 0xd16   :  { %2839 = vmatprep.subr.bf16.mxu0 %v3004_v5 }
 0xde3   :  { %v1271_v60 = vpop.f32.mrb[12].mxu0 }
 0xde4   :  { %v1272_v61 = vadd.f32 %v3100_v21, %v1271_v60  ;;  %v2620_v62 = vpop.f32.mrb[13].mxu0 }
 0xde6   :  { %2927 = vtanh.f32 %v1272_v61 }
 0xdf0   :  { %v2928_v63 = vpop.eup %2927 }
 0xdf1   :  { %v1276_v0 = vmul.f32 0.1, %v2928_v63 }
 0xdf3   :  { %v1277_v1 = vadd.f32 %v1276_v0, %v1201_v59  ;;  %v1996_v0 = vld [vmem:[#allocation2] sm:$0xff] }
 0xdf5   :  { %2630 = vmatmul.mubr.msk.f32.vlgmr.msra.gmra.mrb[16].mxu1 %vm178_vm2, %v1277_v1  ;;  %v1432_v12 = vrot.slane %v1277_v1, 4 }
 0xdf6   :  { %2835 = vmatpush3.bf16.msra.mxu1 %v3060_v6  ;;  %2651 = vmatprep.mubr.msk.f32.mxu1 %vm3003_vm1, %v3002_v2 }
 0xdf7   :  { %2836 = vmatprep.subr.bf16.mxu1 %v3004_v5  ;;  %v1437_v17 = vsel %vm491_vm4, %v1436_v15, %v1432_v12  ;;  %v2328_v12 = vld [vmem:[%s3420_s2 + $0x58] ss:$0 sm:$0xff] }
 0xdfa   :  { %2838 = vmatpush3.bf16.msra.mxu1 %v3079_v14 }
 0xdfb   :  { %2845 = vmatprep.subr.bf16.mxu1 %v3004_v5 }
 0xec8   :  { %v1347_v3 = vpop.f32.mrb[16].mxu1 }
 0xec9   :  { %v1348_v4 = vadd.f32 %v3100_v21, %v1347_v3  ;;  %v2631_v7 = vpop.f32.mrb[17].mxu1  ;;  %v1998_v3 = vld [vmem:[#allocation2 + $0x10] sm:$0xff] }
 0xecb   :  { %2929 = vtanh.f32 %v1348_v4 }
 0xed5   :  { %v2930_v8 = vpop.eup %2929 }
 0xed6   :  { %v1352_v11 = vmul.f32 0.1, %v2930_v8 }
 0xed8   :  { %v1353_v13 = vadd.f32 %v1352_v11, %v1277_v1  ;;  %v1997_v1 = vld [vmem:[#allocation2 + $0x8] sm:$0xff] }
 0xeda   :  { %v1434_v16 = vrot.slane %v1353_v13, 2  ;;  %2641 = vmatmul.mubr.msk.f32.vlgmr.msra.gmra.mrb[14].mxu0 %vm178_vm2, %v1353_v13 }
 0xedb   :  { %2841 = vmatpush3.bf16.msra.mxu0 %v3060_v6  ;;  %2662 = vmatprep.mubr.msk.f32.mxu0 %vm3003_vm1, %v3002_v2 }
 0xedc   :  { %v1438_v18 = vsel %vm493_vm5, %v1437_v17, %v1434_v16  ;;  %2842 = vmatprep.subr.bf16.mxu0 %v3004_v5 }
 0xedd   :  { %1440 = vst.msk [vmem:[#allocation2 + $0x18] sm:$0xff] %vm178_vm2, %v1438_v18 }
 0xedf   :  { %2844 = vmatpush3.bf16.msra.mxu0 %v3079_v14 }
 0xee0   :  { %2851 = vmatprep.subr.bf16.mxu0 %v3004_v5 }
 0xee4   :  { %v1999_v4 = vld [vmem:[#allocation2 + $0x18] sm:$0xff] }
 0xfad   :  { %v1423_v19 = vpop.f32.mrb[14].mxu0 }
 0xfae   :  { %v1424_v20 = vadd.f32 %v3100_v21, %v1423_v19  ;;  %v2642_v22 = vpop.f32.mrb[15].mxu0 }
 0xfb0   :  { %2931 = vtanh.f32 %v1424_v20 }
 0xfba   :  { %v2932_v23 = vpop.eup %2931 }
 0xfbb   :  { %v1428_v24 = vmul.f32 0.1, %v2932_v23 }
 0xfbd   :  { %v1429_v25 = vadd.f32 %v1428_v24, %v1353_v13 }
 0xfbf   :  { %2652 = vmatmul.mubr.msk.f32.vlgmr.msra.gmra.mrb[18].mxu1 %vm178_vm2, %v1429_v25 }
 0xfc0   :  { %2847 = vmatpush3.bf16.msra.mxu1 %v3060_v6  ;;  %2673 = vmatprep.mubr.msk.f32.mxu1 %vm3003_vm1, %v3002_v2 }
 0xfc1   :  { %2848 = vmatprep.subr.bf16.mxu1 %v3004_v5 }
 0xfc4   :  { %2850 = vmatpush3.bf16.msra.mxu1 %v3079_v14 }
 0xfc5   :  { %2857 = vmatprep.subr.bf16.mxu1 %v3004_v5 }
0x1092   :  { %v1510_v26 = vpop.f32.mrb[18].mxu1 }
0x1093   :  { %v1511_v27 = vadd.f32 %v3100_v21, %v1510_v26  ;;  %v2653_v28 = vpop.f32.mrb[19].mxu1 }
0x1095   :  { %2933 = vtanh.f32 %v1511_v27 }
0x109f   :  { %v2934_v29 = vpop.eup %2933 }
0x10a0   :  { %v1515_v30 = vmul.f32 0.1, %v2934_v29 }
0x10a2   :  { %v1516_v31 = vadd.f32 %v1515_v30, %v1429_v25 }
0x10a4   :  { %2663 = vmatmul.mubr.msk.f32.vlgmr.msra.gmra.mrb[16].mxu0 %vm178_vm2, %v1516_v31  ;;  %v1745_v42 = vrot.slane %v1516_v31, 6 }
0x10a5   :  { %2853 = vmatpush3.bf16.msra.mxu0 %v3060_v6  ;;  %2684 = vmatprep.mubr.msk.f32.mxu0 %vm3003_vm1, %v3002_v2 }
0x10a6   :  { %2854 = vmatprep.subr.bf16.mxu0 %v3004_v5  ;;  %v1751_v46 = vsel %vm489_vm3, %v1429_v25, %v1745_v42 }
0x10a9   :  { %2856 = vmatpush3.bf16.msra.mxu0 %v3079_v14 }
0x10aa   :  { %2863 = vmatprep.subr.bf16.mxu0 %v3004_v5 }
0x1177   :  { %v1586_v32 = vpop.f32.mrb[16].mxu0 }
0x1178   :  { %v1587_v33 = vadd.f32 %v3100_v21, %v1586_v32  ;;  %v2664_v34 = vpop.f32.mrb[17].mxu0 }
0x117a   :  { %2935 = vtanh.f32 %v1587_v33 }
0x1184   :  { %v2936_v35 = vpop.eup %2935 }
0x1185   :  { %v1591_v36 = vmul.f32 0.1, %v2936_v35 }
0x1187   :  { %v1592_v37 = vadd.f32 %v1591_v36, %v1516_v31 }
0x1189   :  { %2674 = vmatmul.mubr.msk.f32.vlgmr.msra.gmra.mrb[20].mxu1 %vm178_vm2, %v1592_v37  ;;  %v1747_v44 = vrot.slane %v1592_v37, 4 }
0x118a   :  { %2859 = vmatpush3.bf16.msra.mxu1 %v3060_v6  ;;  %2695 = vmatprep.mubr.msk.f32.mxu1 %vm3003_vm1, %v3002_v2 }
0x118b   :  { %2860 = vmatprep.subr.bf16.mxu1 %v3004_v5  ;;  %v1752_v48 = vsel %vm491_vm4, %v1751_v46, %v1747_v44 }
0x118e   :  { %2862 = vmatpush3.bf16.msra.mxu1 %v3079_v14 }
0x118f   :  { %2869 = vmatprep.subr.bf16.mxu1 %v3004_v5 }
0x125c   :  { %v1662_v38 = vpop.f32.mrb[20].mxu1 }
0x125d   :  { %v1663_v39 = vadd.f32 %v3100_v21, %v1662_v38  ;;  %v2675_v40 = vpop.f32.mrb[21].mxu1 }
0x125f   :  { %2937 = vtanh.f32 %v1663_v39 }
0x1269   :  { %v2938_v41 = vpop.eup %2937 }
0x126a   :  { %v1667_v43 = vmul.f32 0.1, %v2938_v41 }
0x126c   :  { %v1668_v45 = vadd.f32 %v1667_v43, %v1592_v37 }
0x126e   :  { %v1749_v47 = vrot.slane %v1668_v45, 2  ;;  %2685 = vmatmul.mubr.msk.f32.vlgmr.msra.gmra.mrb[18].mxu0 %vm178_vm2, %v1668_v45 }
0x126f   :  { %2865 = vmatpush3.bf16.msra.mxu0 %v3060_v6  ;;  %2706 = vmatprep.mubr.msk.f32.mxu0 %vm3003_vm1, %v3002_v2 }
0x1270   :  { %v1753_v49 = vsel %vm493_vm5, %v1752_v48, %v1749_v47  ;;  %2866 = vmatprep.subr.bf16.mxu0 %v3004_v5 }
0x1271   :  { %1755 = vst.msk [vmem:[#allocation2 + $0x20] sm:$0xff] %vm178_vm2, %v1753_v49 }
0x1273   :  { %2868 = vmatpush3.bf16.msra.mxu0 %v3079_v14 }
0x1274   :  { %2876 = vmatprep.subr.bf16.mxu0 %v2875_v58 }
0x1278   :  { %v2000_v7 = vld [vmem:[#allocation2 + $0x20] sm:$0xff] }
0x1341   :  { %v1738_v50 = vpop.f32.mrb[18].mxu0 }
0x1342   :  { %v1739_v51 = vadd.f32 %v3100_v21, %v1738_v50  ;;  %v2686_v52 = vpop.f32.mrb[19].mxu0 }
0x1344   :  { %2939 = vtanh.f32 %v1739_v51 }
0x134e   :  { %v2940_v53 = vpop.eup %2939 }
0x134f   :  { %v1743_v54 = vmul.f32 0.1, %v2940_v53 }
0x1351   :  { %v3274_v55 = vadd.f32 %v1743_v54, %v1668_v45 }
0x1353   :  { %2696 = vmatmul.mubr.msk.f32.vlgmr.msra.gmra.mrb[22].mxu1 %vm178_vm2, %v3274_v55 }
0x1354   :  { %2871 = vmatpush3.bf16.msra.mxu1 %v3060_v6  ;;  %2717 = vmatprep.mubr.msk.f32.mxu1 %vm3003_vm1, %v3002_v2 }
0x1355   :  { %2872 = vmatprep.subr.bf16.mxu1 %v3004_v5  ;;  %v42_v5 = vld [vmem:[%s3420_s2 + $0x48] sm:$0xff] }
0x1358   :  { %2874 = vmatpush3.bf16.msra.mxu1 %v3079_v14  ;;  %v43_v14 = vld [vmem:[%s3420_s2 + $0x50] sm:$0xff]  ;;  %s3006_s2 = smov 120  }
0x1359   :  { %v2879_v63 = vpack.c.bf16 %v43_v14, %v42_v5 }
0x1426   :  { %v1825_v59 = vpop.f32.mrb[22].mxu1 }
0x1427   :  { %v1826_v6 = vadd.f32 %v3100_v21, %v1825_v59  ;;  %v2697_v60 = vpop.f32.mrb[23].mxu1 }
0x1428   :  { %v2120_v60 = vld [vmem:[%s3419_s1 + $0x8] sm:$0xff] }
0x1429   :  { %2941 = vtanh.f32 %v1826_v6 }
0x1433   :  { %v2942_v2 = vpop.eup %2941 }
0x1434   :  { %v1830_v61 = vmul.f32 0.1, %v2942_v2  ;;  %v2119_v2 = vld [vmem:[%s3419_s1] sm:$0xff] }
0x1436   :  { %v3297_v62 = vadd.f32 %v1830_v61, %v3274_v55 }
0x1438   :  { %2707 = vmatmul.mubr.msk.f32.vlgmr.msra.gmra.mrb[20].mxu0 %vm178_vm2, %v3297_v62  ;;  %v1984_v42 = vrot.slane %v3297_v62, 6 }
0x1439   :  { %2878 = vmatpush3.bf16.msra.mxu0 %v2875_v58  ;;  %2728 = vmatprep.mubr.msk.f32.mxu0 %vm178_vm2, %v1996_v0  ;;  %v2121_v0 = vld [vmem:[%s3419_s1 + $0x10] sm:$0xff] }
0x143a   :  { %2880 = vmatprep.subr.bf16.mxu0 %v2879_v63  ;;  %v1991_v46 = vsel %vm489_vm3, %v3274_v55, %v1984_v42 }
0x143d   :  { %2882 = vmatpush3.bf16.msra.mxu0 %v2879_v63 }
0x1440   :  { %2729 = vmatmul.mubr.msk.f32.vlgmr.msra.gmra.mrb[22].mxu0 %vm178_vm2, %v1997_v1 }
0x1441   :  { %2731 = vmatprep.mubr.msk.f32.mxu0 %vm178_vm2, %v1998_v3 }
0x1444   :  { %2732 = vmatmul.mubr.msk.f32.gmra.mrb[24].mxu0 %vm178_vm2, %v1999_v4 }
0x1445   :  { %2734 = vmatprep.mubr.msk.f32.mxu0 %vm178_vm2, %v2000_v7 }
0x150b   :  { %v1901_v8 = vpop.f32.mrb[20].mxu0 }
0x150c   :  { %v1902_v10 = vadd.f32 %v3100_v21, %v1901_v8  ;;  %v2708_v11 = vpop.f32.mrb[21].mxu0 }
0x150e   :  { %2943 = vtanh.f32 %v1902_v10 }
0x1513   :  { %v2730_v13 = vpop.f32.mrb[22].mxu0 }
0x1514   :  { %v3310_v15 = vadd.f32 %v2730_v13, %v2328_v12  ;;  %v2090_v16 = vpop.f32.mrb[23].mxu0 }
0x1515   :  { %v3312_v17 = vadd.f32 %v2328_v12, %v2090_v16 }
0x1516   :  { %v2138_v18 = vsub.f32 0.0, %v3310_v15  ;;  %v2126_v5 = vsub.f32 %v2120_v60, %v3310_v15 }
0x1517   :  { %v2137_v19 = vsub.f32 0.0, %v3312_v17  ;;  %v2733_v20 = vpop.f32.mrb[24].mxu0  ;;  %v2125_v61 = vsub.f32 %v2119_v2, %v3312_v17 }
0x1518   :  { %v2944_v22 = vpop.eup %2943  ;;  %v2145_v23 = vmul.f32 1.442695, %v2138_v18  ;;  %v3316_v24 = vadd.f32 %v2733_v20, %v2328_v12  ;;  %v2100_v25 = vpop.f32.mrb[25].mxu0  ;;  %v2132_v4 = vmul.f32 %v2126_v5, %v2126_v5 }
0x1519   :  { %v1906_v26 = vmul.f32 0.1, %v2944_v22  ;;  %v2143_v27 = vmul.f32 1.442695, %v2137_v19  ;;  %v3318_v28 = vadd.f32 %v2328_v12, %v2100_v25  ;;  %v2131_v8 = vmul.f32 %v2125_v61, %v2125_v61 }
0x151a   :  { %2945 = vpow2.f32 %v2145_v23  ;;  %v2140_v29 = vsub.f32 0.0, %v3316_v24  ;;  %v138_v19 = vstv %s31_s27 }
0x151b   :  { %v1907_v30 = vadd.f32 %v1906_v26, %v3297_v62  ;;  %2947 = vpow2.f32 %v2143_v27  ;;  %v2139_v31 = vsub.f32 0.0, %v3318_v28  ;;  %v2122_v62 = vld [vmem:[%s3419_s1 + $0x18] sm:$0xff]  ;;  %v2127_v10 = vsub.f32 %v2121_v0, %v3318_v28  ;;  %v2124_v27 = vld [vmem:[%s3419_s1 + $0x28] sm:$0xff] }
0x151c   :  { %v2149_v32 = vmul.f32 1.442695, %v2140_v29  ;;  %v2128_v7 = vsub.f32 %v2122_v62, %v3316_v24  ;;  %v139_v25 = vsub.f32 %v3070_v9, %v138_v19  ;;  %v2123_v29 = vld [vmem:[%s3419_s1 + $0x20] sm:$0xff] }
0x151d   :  { %v2147_v33 = vmul.f32 1.442695, %v2139_v31  ;;  %2718 = vmatmul.mubr.msk.f32.vlgmr.msra.gmra.mrb[24].mxu1 %vm178_vm2, %v1907_v30  ;;  %v1986_v44 = vrot.slane %v1907_v30, 4  ;;  %v2133_v20 = vmul.f32 %v2127_v10, %v2127_v10 }
0x151e   :  { %2949 = vpow2.f32 %v2149_v32  ;;  %v2134_v18 = vmul.f32 %v2128_v7, %v2128_v7  ;;  %v140_v26 = vmul.f32 %v139_v25, %v139_v25 }
0x151f   :  { %2951 = vpow2.f32 %v2147_v33  ;;  %v1992_v48 = vsel %vm491_vm4, %v1991_v46, %v1986_v44 }
0x1524   :  { %v2946_v34 = vpop.eup %2945 }
0x1525   :  { %v2948_v35 = vpop.eup %2947  ;;  %2163 = vrot.lane.b32.xlu1 %v2946_v34, %s3006_s2 }
0x1526   :  { %2161 = vrot.lane.b32.xlu0 %v2948_v35, %s3006_s2 }
0x1528   :  { %v2950_v36 = vpop.eup %2949 }
0x1529   :  { %v2952_v37 = vpop.eup %2951 }
0x152a   :  { %2165 = vrot.lane.b32.xlu1 %v2952_v37, %s3006_s2  ;;  %2167 = vrot.lane.b32.xlu0 %v2950_v36, %s3006_s2 }
0x1597   :  { %v2164_v63 = vpop.permute.xlu1 %2163 }
0x1598   :  { %v2162_v14 = vpop.permute.xlu0 %2161  ;;  %v2180_v11 = vmul.f32 %v2164_v63, %v2132_v4 }
0x159c   :  { %v2168_v13 = vpop.permute.xlu0 %2167  ;;  %v2166_v16 = vpop.permute.xlu1 %2165 }
0x159d   :  { %v2182_v22 = vmul.f32 %v2168_v13, %v2134_v18  ;;  %v2181_v23 = vmul.f32 %v2166_v16, %v2133_v20 }
0x15f0   :  { %v1977_v38 = vpop.f32.mrb[24].mxu1 }
0x15f1   :  { %v1978_v39 = vadd.f32 %v3100_v21, %v1977_v38  ;;  %v2719_v40 = vpop.f32.mrb[25].mxu1  ;;  %v147_v21 = vstv %s146_s23 }
0x15f2   :  { %v148_v51 = vmul.f32 1.442695, %v147_v21 }
0x15f3   :  { %2953 = vtanh.f32 %v1978_v39 }
0x15f4   :  { %2955 = vpow2.f32 %v148_v51 }
0x15fd   :  { %v2954_v41 = vpop.eup %2953 }
0x15fe   :  { %v1982_v43 = vmul.f32 0.1, %v2954_v41  ;;  %v2956_v52 = vpop.eup %2955 }
0x15ff   :  { %2883 = vpush %v2956_v52 }
0x1600   :  { %v1983_v45 = vadd.f32 %v1982_v43, %v1907_v30 }
0x1602   :  { %v1989_v47 = vrot.slane %v1983_v45, 2 }
0x1604   :  { %v1993_v49 = vsel %vm493_vm5, %v1992_v48, %v1989_v47 }
0x1605   :  { %1995 = vst.msk [vmem:[#allocation2 + $0x28] sm:$0xff] %vm178_vm2, %v1993_v49 }
0x160c   :  { %v2001_v50 = vld [vmem:[#allocation2 + $0x28] sm:$0xff] }
0x160d   :  { %2735 = vmatmul.mubr.msk.f32.gmra.mrb[26].mxu0 %vm178_vm2, %v2001_v50 }
0x1630   :  { %s2884_s1 = spop %2883 }
0x16e0   :  { %v2736_v53 = vpop.f32.mrb[26].mxu0 }
0x16e1   :  { %v3339_v54 = vadd.f32 %v2736_v53, %v2328_v12  ;;  %v2110_v55 = vpop.f32.mrb[27].mxu0  ;;  %v151_v53 = vstv %s2884_s1 }
0x16e2   :  { %v3341_v56 = vadd.f32 %v2328_v12, %v2110_v55  ;;  %v2179_v12 = vmul.f32 %v2162_v14, %v2131_v8  ;;  %v134_v55 = vstv %s3336_s22 }
0x16e3   :  { %v2142_v57 = vsub.f32 0.0, %v3339_v54  ;;  %v2130_v30 = vsub.f32 %v2124_v27, %v3339_v54 }
0x16e4   :  { %v2141_v58 = vsub.f32 0.0, %v3341_v56  ;;  %v2129_v31 = vsub.f32 %v2123_v29, %v3341_v56 }
0x16e5   :  { %v2153_v59 = vmul.f32 1.442695, %v2142_v57  ;;  %v2136_v32 = vmul.f32 %v2130_v30, %v2130_v30 }
0x16e6   :  { %v2151_v6 = vmul.f32 1.442695, %v2141_v58  ;;  %v2135_v34 = vmul.f32 %v2129_v31, %v2129_v31  ;;  %v135_v58 = vsub.f32 %v134_v55, %v3070_v9 }
0x16e7   :  { %2957 = vpow2.f32 %v2153_v59 }
0x16e8   :  { %2959 = vpow2.f32 %v2151_v6 }
0x16f1   :  { %v2958_v1 = vpop.eup %2957 }
0x16f2   :  { %v2960_v3 = vpop.eup %2959  ;;  %2171 = vrot.lane.b32.xlu0 %v2958_v1, %s3006_s2 }
0x16f3   :  { %2169 = vrot.lane.b32.xlu1 %v2960_v3, %s3006_s2 }
0x16f6   :  { %2193 = vrot.lane.b32.xlu0 %v2180_v11, %s3007_s6 }
0x16f7   :  { %2191 = vrot.lane.b32.xlu1 %v2179_v12, %s3007_s6 }
0x16fa   :  { %2197 = vrot.lane.b32.xlu0 %v2182_v22, %s3007_s6 }
0x16fb   :  { %2195 = vrot.lane.b32.xlu1 %v2181_v23, %s3007_s6 }
0x16ff   :  { %142 = vrot.lane.b32.xlu1 %v140_v26, %s3008_s8 }
0x1764   :  { %v2172_v33 = vpop.permute.xlu0 %2171 }
0x1765   :  { %v2184_v35 = vmul.f32 %v2172_v33, %v2136_v32  ;;  %v2170_v36 = vpop.permute.xlu1 %2169 }
0x1766   :  { %v2183_v37 = vmul.f32 %v2170_v36, %v2135_v34 }
0x1767   :  { %2201 = vrot.lane.b32.xlu1 %v2184_v35, %s3007_s6 }
0x1768   :  { %v2194_v38 = vpop.permute.xlu0 %2193  ;;  %2199 = vrot.lane.b32.xlu0 %v2183_v37, %s3007_s6 }
0x1769   :  { %v2210_v39 = vadd.f32 %v2194_v38, %v3310_v15  ;;  %v2192_v40 = vpop.permute.xlu1 %2191 }
0x176a   :  { %v2209_v41 = vadd.f32 %v2192_v40, %v3312_v17  ;;  %v136_v17 = vmul.f32 1.442695, %v3070_v9 }
0x176b   :  { %v2216_v42 = vadd.f32 1.837877, %v2210_v39 }
0x176c   :  { %v2215_v43 = vadd.f32 1.837877, %v2209_v41  ;;  %v2198_v44 = vpop.permute.xlu0 %2197  ;;  %2961 = vpow2.f32 %v136_v17 }
0x176d   :  { %v2222_v45 = vmul.f32 0.5, %v2216_v42  ;;  %v2212_v46 = vadd.f32 %v2198_v44, %v3316_v24  ;;  %v2196_v47 = vpop.permute.xlu1 %2195 }
0x176e   :  { %v2221_v48 = vmul.f32 0.5, %v2215_v43  ;;  %v2211_v49 = vadd.f32 %v2196_v47, %v3318_v28 }
0x176f   :  { %v2218_v50 = vadd.f32 1.837877, %v2212_v46  ;;  %2235 = vrot.lane.b32.xlu1 %v2222_v45, %s3006_s2 }
0x1770   :  { %v2217_v21 = vadd.f32 1.837877, %v2211_v49  ;;  %2233 = vrot.lane.b32.xlu0 %v2221_v48, %s3006_s2 }
0x1771   :  { %v2224_v15 = vmul.f32 0.5, %v2218_v50  ;;  %v143_v24 = vpop.permute.xlu1 %142 }
0x1772   :  { %v2223_v51 = vmul.f32 0.5, %v2217_v21 }
0x1773   :  { %2239 = vrot.lane.b32.xlu1 %v2224_v15, %s3006_s2 }
0x1774   :  { %2237 = vrot.lane.b32.xlu0 %v2223_v51, %s3006_s2 }
0x1776   :  { %v2962_v52 = vpop.eup %2961 }
0x1777   :  { %v145_v28 = vadd.f32 %v2962_v52, %v143_v24 }
0x1779   :  { %v152_v57 = vmul.f32 %v151_v53, %v145_v28 }
0x177b   :  { %v153_v2 = vadd.f32 %v152_v57, %v135_v58 }
0x177d   :  { %v2303_v63 = vadd.f32 -1.0, %v153_v2 }
0x177f   :  { %v155_v1 = vmul.f32 0.5, %v2303_v63 }
0x17d9   :  { %v2202_v59 = vpop.permute.xlu1 %2201 }
0x17da   :  { %v2214_v6 = vadd.f32 %v2202_v59, %v3339_v54  ;;  %v2200_v60 = vpop.permute.xlu0 %2199 }
0x17db   :  { %v2213_v5 = vadd.f32 %v2200_v60, %v3341_v56 }
0x17dc   :  { %v2220_v14 = vadd.f32 1.837877, %v2214_v6 }
0x17dd   :  { %v2219_v61 = vadd.f32 1.837877, %v2213_v5 }
0x17de   :  { %v2226_v62 = vmul.f32 0.5, %v2220_v14 }
0x17df   :  { %v2225_v0 = vmul.f32 0.5, %v2219_v61 }
0x17e0   :  { %2243 = vrot.lane.b32.xlu1 %v2226_v62, %s3006_s2 }
0x17e1   :  { %2241 = vrot.lane.b32.xlu0 %v2225_v0, %s3006_s2  ;;  %v2236_v3 = vpop.permute.xlu1 %2235 }
0x17e2   :  { %v2234_v9 = vpop.permute.xlu0 %2233  ;;  %v2252_v54 = vsel %vm51_vm0, %v2236_v3, 0.0 }
0x17e3   :  { %v2251_v7 = vsel %vm51_vm0, %v2234_v9, 0.0 }
0x17e4   :  { %v2253_v8 = vadd.f32 %v2252_v54, %v2251_v7 }
0x17e5   :  { %157 = vrot.lane.b32.xlu0 %v155_v1, %s3005_s7  ;;  %v2240_v10 = vpop.permute.xlu1 %2239 }
0x17e6   :  { %v2238_v4 = vpop.permute.xlu0 %2237  ;;  %v2256_v12 = vsel %vm51_vm0, %v2240_v10, 0.0 }
0x17e7   :  { %v2254_v56 = vsel %vm51_vm0, %v2238_v4, 0.0 }
0x17e8   :  { %v2255_v11 = vadd.f32 %v2254_v56, %v2253_v8 }
0x17ea   :  { %v2257_v18 = vadd.f32 %v2256_v12, %v2255_v11 }
0x1852   :  { %v2244_v13 = vpop.permute.xlu1 %2243 }
0x1853   :  { %v2242_v16 = vpop.permute.xlu0 %2241  ;;  %v2260_v22 = vsel %vm51_vm0, %v2244_v13, 0.0 }
0x1854   :  { %v2258_v19 = vsel %vm51_vm0, %v2242_v16, 0.0 }
0x1855   :  { %v2259_v20 = vadd.f32 %v2258_v19, %v2257_v18 }
0x1857   :  { %v158_v23 = vpop.permute.xlu0 %157  ;;  %v2261_v25 = vadd.f32 %v2260_v22, %v2259_v20 }
0x1858   :  { %v161_v26 = vsel %vm160_vm6, %v158_v23, 0.0 }
0x1859   :  { %162 = vadd.xlane.f32.xlu1 %v161_v26  ;;  %2262 = vadd.xlane.f32.xlu0 %v2261_v25 }
0x18e6   :  { %v2263_v27 = vpop.xlane.xlu0 %2262  ;;  %v163_v29 = vpop.xlane.xlu1 %162 }
0x18e7   :  { %v2264_v30 = vrot.slane %v2263_v27, 4  ;;  %v164_v31 = vrot.slane %v163_v29, 4 }
0x18e9   :  { %v2265_v32 = vadd.f32 %v2264_v30, %v2263_v27  ;;  %v165_v33 = vadd.f32 %v164_v31, %v163_v29 }
0x18eb   :  { %v2266_v34 = vrot.slane %v2265_v32, 2  ;;  %v166_v35 = vrot.slane %v165_v33, 2 }
0x18ed   :  { %v2267_v36 = vadd.f32 %v2266_v34, %v2265_v32  ;;  %v167_v37 = vadd.f32 %v166_v35, %v165_v33 }
0x18ef   :  { %v168_v38 = vrot.slane %v167_v37, 1  ;;  %v2268_v39 = vrot.slane %v2267_v36, 1 }
0x18f1   :  { %v169_v40 = vadd.f32 %v168_v38, %v167_v37  ;;  %v2269_v41 = vadd.f32 %v2268_v39, %v2267_v36 }
0x18f3   :  { %2885 = vpush %v169_v40 }
0x18f4   :  { %2887 = vpush %v2269_v41 }
0x1924   :  { %s2886_s7 = spop %2885 }
0x1925   :  { %s171_s13 = smul.f32 0.5, %s2886_s7  ;;  %s2888_s14 = spop %2887 }
0x1926   :  { %s2271_s15 = smul.f32 0.020833334, %s2888_s14 }
0x1927   :  { %173 = sst [smem:[#allocation7]] %s171_s13 }
0x1928   :  { %2273 = sst [smem:[#allocation6]] %s2271_s15 }
0x1929   :  { %2984 = shalt.err (!%p2981_p7)
}
0x192a   :  { %s3009_s22 = smov [#allocation6]   ;;  %s2985_s26 = scalar_lea.hbm %s3422_s4, 16 }
0x192b   :  { %2281 = dma.smem_to_hbm %s3009_s22, 16, %s3421_s3, [#allocation4]  }
0x192c   :  { %p2986_p8 = scmp.ne.s32.totalorder %s3422_s4, %s2985_s26  ;;  %p2989_p9 = scmp.lt.u32.totalorder %s2985_s26, %s3422_s4 }
0x192e   :  { %p2991_p10 = pnand %p2989_p9, %p2986_p8 }
0x1930   :  { %2994 = shalt.err (!%p2991_p10)
}
0x1931   :  { %s3010_s5 = smov [#allocation7]  }
0x1932   :  { %2289 = dma.smem_to_hbm %s3010_s5, 16, %s3422_s4, [#allocation8]  }
0x1933   :  { %2997 = dma.done.wait [#allocation4], 16  }
0x1934   :  { %2998 = vsyncadd [#allocation4], 4294967280 }
0x1935   :  { %2999 = dma.done.wait [#allocation8], 16  }
0x1936   :  { %3000 = vsyncadd [#allocation8], 4294967280 }
0x1937   :  { %2296 = sfence }
0x1938   :  { %2297 = vsyncpa [#allocation4], 1 }
0x1939   :  { %2298 = vsyncpa [#allocation8], 1 }
0x193a   :  { %2299 = vsyncpa [#allocation5], 1 }

</bundles_post_ra>
